<compile_context>
chip_gen: v7x
topology: tpu7x:2x2x1
jax: 0.10.0
libtpu: 0.0.40
codegen_flags: <defaults>
</compile_context>

<pallas_src>
import jax
import jax.numpy as jnp
from jax.experimental import pallas as pl
from jax.experimental.pallas import tpu as pltpu

LANE = 128
SUBLANE = 8


def _round_up(n, m):
    return ((n + m - 1) // m) * m


def _pad2d(a, rows, cols):
    return jnp.pad(a, ((0, rows - a.shape[0]), (0, cols - a.shape[1])))


def ae_kernel(
    x_ref,
    w_e1, b_e1, w_e2, b_e2, w_e3, b_e3,
    w_z, b_z,
    w_d1, b_d1, w_d2, b_d2, w_d3, b_d3,
    w_xb, b_xb,
    xbar_ref, h1_ref, h2_ref, h3_ref, z_ref,
):
    def linear(h, w_ref, b_ref):
        # bf16 operands on the MXU, f32 accumulation; bias add stays in f32.
        return (
            jnp.dot(h.astype(jnp.bfloat16), w_ref[...],
                    preferred_element_type=jnp.float32)
            + b_ref[...]
        )

    x = x_ref[...]

    enc_h1 = jnp.maximum(linear(x, w_e1, b_e1), 0.0)
    enc_h2 = jnp.maximum(linear(enc_h1, w_e2, b_e2), 0.0)
    enc_h3 = jnp.maximum(linear(enc_h2, w_e3, b_e3), 0.0)
    z = linear(enc_h3, w_z, b_z)

    dec_h1 = jnp.maximum(linear(z, w_d1, b_d1), 0.0)
    dec_h2 = jnp.maximum(linear(dec_h1, w_d2, b_d2), 0.0)
    dec_h3 = jnp.maximum(linear(dec_h2, w_d3, b_d3), 0.0)
    x_bar = linear(dec_h3, w_xb, b_xb)

    xbar_ref[...] = x_bar.astype(xbar_ref.dtype)
    h1_ref[...] = enc_h1.astype(h1_ref.dtype)
    h2_ref[...] = enc_h2.astype(h2_ref.dtype)
    h3_ref[...] = enc_h3.astype(h3_ref.dtype)
    z_ref[...] = z.astype(z_ref.dtype)


def ae_forward(x, params, *, block_b=256):
    """params: list of (W, b) pairs in layer order (8 layers), W is (in, out)."""
    B, n_input = x.shape
    dims_out = [w.shape[1] for (w, _) in params]
    n_enc_1, n_enc_2, n_enc_3, n_z, n_dec_1, n_dec_2, n_dec_3, n_out = dims_out
    assert n_out == n_input, "x_bar_layer must map back to n_input"

    # ---- pad feature dims to lane-dense multiples of 128 -------------------
    p_in = _round_up(n_input, LANE)
    p_dims = [_round_up(d, LANE) for d in dims_out]
    p_e1, p_e2, p_e3, p_z, p_d1, p_d2, p_d3, p_out = p_dims
    # padded in-dim for each of the 8 layers (chained through the network)
    in_p = [p_in, p_e1, p_e2, p_e3, p_z, p_d1, p_d2, p_d3]

    # ---- batch tiling -------------------------------------------------------
    b8 = _round_up(B, SUBLANE)
    tb = min(block_b, b8)          # batch tile (>=8-row aligned)
    b_pad = _round_up(B, tb)
    grid = (b_pad // tb,)

    x_p = jnp.pad(x.astype(jnp.float32),
                  ((0, b_pad - B), (0, p_in - n_input)))

    flat_args = [x_p]
    in_specs = [pl.BlockSpec((tb, p_in), lambda i: (i, 0))]
    for (w, b), pi, po in zip(params, in_p, p_dims):
        # weights stored bf16 (half the HBM->VMEM traffic / VMEM footprint)
        w_p = _pad2d(w.astype(jnp.float32), pi, po).astype(jnp.bfloat16)
        # biases stay f32; padded lanes are zero so ReLU(0)=0 downstream.
        b_p = jnp.pad(b.astype(jnp.float32), (0, po - b.shape[0])).reshape(1, po)
        flat_args += [w_p, b_p]
        in_specs += [
            pl.BlockSpec((pi, po), lambda i: (0, 0)),   # resident across grid
            pl.BlockSpec((1, po), lambda i: (0, 0)),
        ]

    out_pad_dims = [p_out, p_e1, p_e2, p_e3, p_z]       # x_bar, h1, h2, h3, z
    out_shapes = tuple(
        jax.ShapeDtypeStruct((b_pad, d), jnp.float32) for d in out_pad_dims
    )
    out_specs = tuple(
        pl.BlockSpec((tb, d), lambda i: (i, 0)) for d in out_pad_dims
    )

    outs = pl.pallas_call(
        ae_kernel,
        out_shape=out_shapes,
        grid=grid,
        in_specs=in_specs,
        out_specs=out_specs,
        compiler_params=pltpu.CompilerParams(
            # batch axis is embarrassingly parallel -> megacore on v7x
            dimension_semantics=("parallel",),
            # explicit budget: above the 16/32 MiB scoped defaults, safely
            # under v7x's 64 MiB physical VMEM.
            vmem_limit_bytes=48 * 1024 * 1024,
        ),
    )(*flat_args)

    xbar_p, h1_p, h2_p, h3_p, z_p = outs
    # strip batch + lane padding
    return (
        xbar_p[:B, :n_input],
        h1_p[:B, :n_enc_1],
        h2_p[:B, :n_enc_2],
        h3_p[:B, :n_enc_3],
        z_p[:B, :n_z],
    )


def init_linear(key, fan_in, fan_out):
    # PyTorch nn.Linear default init: U(-1/sqrt(fan_in), 1/sqrt(fan_in))
    kw, kb = jax.random.split(key)
    bound = 1.0 / jnp.sqrt(jnp.float32(fan_in))
    w = jax.random.uniform(kw, (fan_in, fan_out), jnp.float32, -bound, bound)
    b = jax.random.uniform(kb, (fan_out,), jnp.float32, -bound, bound)
    return w, b


def make_params(key, n_enc_1, n_enc_2, n_enc_3, n_dec_1, n_dec_2, n_dec_3,
                n_input, n_z):
    dims = [
        (n_input, n_enc_1),   # enc_1
        (n_enc_1, n_enc_2),   # enc_2
        (n_enc_2, n_enc_3),   # enc_3
        (n_enc_3, n_z),       # z_layer
        (n_z, n_dec_1),       # dec_1
        (n_dec_1, n_dec_2),   # dec_2
        (n_dec_2, n_dec_3),   # dec_3
        (n_dec_3, n_input),   # x_bar_layer
    ]
    keys = jax.random.split(key, len(dims))
    return [init_linear(k, fi, fo) for k, (fi, fo) in zip(keys, dims)]


def reference_forward(x, params):
    """Plain-JAX reference with the same bf16-operand / f32-accum matmuls."""
    def lin(h, wb):
        w, b = wb
        return jnp.dot(h.astype(jnp.bfloat16), w.astype(jnp.bfloat16),
                       preferred_element_type=jnp.float32) + b

    enc_h1 = jax.nn.relu(lin(x, params[0]))
    enc_h2 = jax.nn.relu(lin(enc_h1, params[1]))
    enc_h3 = jax.nn.relu(lin(enc_h2, params[2]))
    z = lin(enc_h3, params[3])
    dec_h1 = jax.nn.relu(lin(z, params[4]))
    dec_h2 = jax.nn.relu(lin(dec_h1, params[5]))
    dec_h3 = jax.nn.relu(lin(dec_h2, params[6]))
    x_bar = lin(dec_h3, params[7])
    return x_bar, enc_h1, enc_h2, enc_h3, z


if __name__ == "__main__":
    key = jax.random.PRNGKey(0)
    k_x, k_p = jax.random.split(key)

    # Small, forward-consistent sizes; n_z=10 deliberately not a multiple of
    # 128 to exercise the lane-padding path.
    B = 48
    n_input = 64
    n_enc_1, n_enc_2, n_enc_3 = 128, 64, 32
    n_dec_1, n_dec_2, n_dec_3 = 32, 64, 128
    n_z = 10

    x = jax.random.normal(k_x, (B, n_input), jnp.float32)
    params = make_params(k_p, n_enc_1, n_enc_2, n_enc_3,
                         n_dec_1, n_dec_2, n_dec_3, n_input, n_z)

    refs = jax.block_until_ready(reference_forward(x, params))

    # (1) multi-step grid path: batch tile of 16 -> 3 grid steps
    outs = jax.block_until_ready(ae_forward(x, params, block_b=16))
    for o, r in zip(outs, refs):
        assert o.shape == r.shape and o.dtype == r.dtype
        assert jnp.allclose(o, r, atol=1e-4, rtol=1e-4), \
            float(jnp.max(jnp.abs(o - r)))

    # (2) single-step path with the default (large) batch tile
    outs2 = jax.block_until_ready(ae_forward(x, params))
    for o, r in zip(outs2, refs):
        assert o.shape == r.shape and o.dtype == r.dtype
        assert jnp.allclose(o, r, atol=1e-4, rtol=1e-4), \
            float(jnp.max(jnp.abs(o - r)))

    print("KERNEL_OK")
</pallas_src>

<mosaic_0001>
module attributes {stable_mosaic.version = 11 : i64} {
  func.func @ae_kernel(%arg0: i32, %arg1: memref<16x128xf32, #tpu.memory_space<vmem>>, %arg2: memref<128x128xbf16, #tpu.memory_space<vmem>>, %arg3: memref<1x128xf32, #tpu.memory_space<vmem>>, %arg4: memref<128x128xbf16, #tpu.memory_space<vmem>>, %arg5: memref<1x128xf32, #tpu.memory_space<vmem>>, %arg6: memref<128x128xbf16, #tpu.memory_space<vmem>>, %arg7: memref<1x128xf32, #tpu.memory_space<vmem>>, %arg8: memref<128x128xbf16, #tpu.memory_space<vmem>>, %arg9: memref<1x128xf32, #tpu.memory_space<vmem>>, %arg10: memref<128x128xbf16, #tpu.memory_space<vmem>>, %arg11: memref<1x128xf32, #tpu.memory_space<vmem>>, %arg12: memref<128x128xbf16, #tpu.memory_space<vmem>>, %arg13: memref<1x128xf32, #tpu.memory_space<vmem>>, %arg14: memref<128x128xbf16, #tpu.memory_space<vmem>>, %arg15: memref<1x128xf32, #tpu.memory_space<vmem>>, %arg16: memref<128x128xbf16, #tpu.memory_space<vmem>>, %arg17: memref<1x128xf32, #tpu.memory_space<vmem>>, %arg18: memref<16x128xf32, #tpu.memory_space<vmem>>, %arg19: memref<16x128xf32, #tpu.memory_space<vmem>>, %arg20: memref<16x128xf32, #tpu.memory_space<vmem>>, %arg21: memref<16x128xf32, #tpu.memory_space<vmem>>, %arg22: memref<16x128xf32, #tpu.memory_space<vmem>>) attributes {dimension_semantics = [#tpu.dimension_semantics<parallel>], iteration_bounds = array<i64: 3>, scalar_prefetch = 0 : i64, scratch_operands = 0 : i64, tpu.core_type = #tpu.core_type<tc>, window_params = [{transform_indices = @transform_0, window_bounds = array<i64: 16, 128>}, {pipeline_mode = #tpu.pipeline_mode<synchronous>, transform_indices = @transform_1, window_bounds = array<i64: 128, 128>}, {pipeline_mode = #tpu.pipeline_mode<synchronous>, transform_indices = @transform_2, window_bounds = array<i64: 1, 128>}, {pipeline_mode = #tpu.pipeline_mode<synchronous>, transform_indices = @transform_3, window_bounds = array<i64: 128, 128>}, {pipeline_mode = #tpu.pipeline_mode<synchronous>, transform_indices = @transform_4, window_bounds = array<i64: 1, 128>}, {pipeline_mode = #tpu.pipeline_mode<synchronous>, transform_indices = @transform_5, window_bounds = array<i64: 128, 128>}, {pipeline_mode = #tpu.pipeline_mode<synchronous>, transform_indices = @transform_6, window_bounds = array<i64: 1, 128>}, {pipeline_mode = #tpu.pipeline_mode<synchronous>, transform_indices = @transform_7, window_bounds = array<i64: 128, 128>}, {pipeline_mode = #tpu.pipeline_mode<synchronous>, transform_indices = @transform_8, window_bounds = array<i64: 1, 128>}, {pipeline_mode = #tpu.pipeline_mode<synchronous>, transform_indices = @transform_9, window_bounds = array<i64: 128, 128>}, {pipeline_mode = #tpu.pipeline_mode<synchronous>, transform_indices = @transform_10, window_bounds = array<i64: 1, 128>}, {pipeline_mode = #tpu.pipeline_mode<synchronous>, transform_indices = @transform_11, window_bounds = array<i64: 128, 128>}, {pipeline_mode = #tpu.pipeline_mode<synchronous>, transform_indices = @transform_12, window_bounds = array<i64: 1, 128>}, {pipeline_mode = #tpu.pipeline_mode<synchronous>, transform_indices = @transform_13, window_bounds = array<i64: 128, 128>}, {pipeline_mode = #tpu.pipeline_mode<synchronous>, transform_indices = @transform_14, window_bounds = array<i64: 1, 128>}, {pipeline_mode = #tpu.pipeline_mode<synchronous>, transform_indices = @transform_15, window_bounds = array<i64: 128, 128>}, {pipeline_mode = #tpu.pipeline_mode<synchronous>, transform_indices = @transform_16, window_bounds = array<i64: 1, 128>}, {transform_indices = @transform_17, window_bounds = array<i64: 16, 128>}, {transform_indices = @transform_18, window_bounds = array<i64: 16, 128>}, {transform_indices = @transform_19, window_bounds = array<i64: 16, 128>}, {transform_indices = @transform_20, window_bounds = array<i64: 16, 128>}, {transform_indices = @transform_21, window_bounds = array<i64: 16, 128>}]} {
    %c0 = arith.constant 0 : index
    %c0_0 = arith.constant 0 : index
    %0 = vector.load %arg1[%c0, %c0_0] : memref<16x128xf32, #tpu.memory_space<vmem>>, vector<16x128xf32>
    %1 = arith.truncf %0 : vector<16x128xf32> to vector<16x128xbf16>
    %c0_1 = arith.constant 0 : index
    %c0_2 = arith.constant 0 : index
    %2 = vector.load %arg2[%c0_1, %c0_2] : memref<128x128xbf16, #tpu.memory_space<vmem>>, vector<128x128xbf16>
    %cst = arith.constant dense<0.000000e+00> : vector<16x128xf32>
    %3 = tpu.matmul %1, %2, %cst {dimension_numbers = #tpu.dot_dimension_numbers<[1], [0], [0], [1], [0, 0, 1, 1], [], []>} : vector<16x128xbf16>, vector<128x128xbf16>, vector<16x128xf32> -> vector<16x128xf32>
    %c0_3 = arith.constant 0 : index
    %c0_4 = arith.constant 0 : index
    %4 = vector.load %arg3[%c0_3, %c0_4] : memref<1x128xf32, #tpu.memory_space<vmem>>, vector<1x128xf32>
    %5 = vector.broadcast %4 : vector<1x128xf32> to vector<16x128xf32>
    %6 = arith.addf %3, %5 : vector<16x128xf32>
    %cst_5 = arith.constant 0.000000e+00 : f32
    %7 = vector.broadcast %cst_5 : f32 to vector<16x128xf32>
    %8 = arith.maximumf %6, %7 : vector<16x128xf32>
    %9 = arith.truncf %8 : vector<16x128xf32> to vector<16x128xbf16>
    %c0_6 = arith.constant 0 : index
    %c0_7 = arith.constant 0 : index
    %10 = vector.load %arg4[%c0_6, %c0_7] : memref<128x128xbf16, #tpu.memory_space<vmem>>, vector<128x128xbf16>
    %cst_8 = arith.constant dense<0.000000e+00> : vector<16x128xf32>
    %11 = tpu.matmul %9, %10, %cst_8 {dimension_numbers = #tpu.dot_dimension_numbers<[1], [0], [0], [1], [0, 0, 1, 1], [], []>} : vector<16x128xbf16>, vector<128x128xbf16>, vector<16x128xf32> -> vector<16x128xf32>
    %c0_9 = arith.constant 0 : index
    %c0_10 = arith.constant 0 : index
    %12 = vector.load %arg5[%c0_9, %c0_10] : memref<1x128xf32, #tpu.memory_space<vmem>>, vector<1x128xf32>
    %13 = vector.broadcast %12 : vector<1x128xf32> to vector<16x128xf32>
    %14 = arith.addf %11, %13 : vector<16x128xf32>
    %cst_11 = arith.constant 0.000000e+00 : f32
    %15 = vector.broadcast %cst_11 : f32 to vector<16x128xf32>
    %16 = arith.maximumf %14, %15 : vector<16x128xf32>
    %17 = arith.truncf %16 : vector<16x128xf32> to vector<16x128xbf16>
    %c0_12 = arith.constant 0 : index
    %c0_13 = arith.constant 0 : index
    %18 = vector.load %arg6[%c0_12, %c0_13] : memref<128x128xbf16, #tpu.memory_space<vmem>>, vector<128x128xbf16>
    %cst_14 = arith.constant dense<0.000000e+00> : vector<16x128xf32>
    %19 = tpu.matmul %17, %18, %cst_14 {dimension_numbers = #tpu.dot_dimension_numbers<[1], [0], [0], [1], [0, 0, 1, 1], [], []>} : vector<16x128xbf16>, vector<128x128xbf16>, vector<16x128xf32> -> vector<16x128xf32>
    %c0_15 = arith.constant 0 : index
    %c0_16 = arith.constant 0 : index
    %20 = vector.load %arg7[%c0_15, %c0_16] : memref<1x128xf32, #tpu.memory_space<vmem>>, vector<1x128xf32>
    %21 = vector.broadcast %20 : vector<1x128xf32> to vector<16x128xf32>
    %22 = arith.addf %19, %21 : vector<16x128xf32>
    %cst_17 = arith.constant 0.000000e+00 : f32
    %23 = vector.broadcast %cst_17 : f32 to vector<16x128xf32>
    %24 = arith.maximumf %22, %23 : vector<16x128xf32>
    %25 = arith.truncf %24 : vector<16x128xf32> to vector<16x128xbf16>
    %c0_18 = arith.constant 0 : index
    %c0_19 = arith.constant 0 : index
    %26 = vector.load %arg8[%c0_18, %c0_19] : memref<128x128xbf16, #tpu.memory_space<vmem>>, vector<128x128xbf16>
    %cst_20 = arith.constant dense<0.000000e+00> : vector<16x128xf32>
    %27 = tpu.matmul %25, %26, %cst_20 {dimension_numbers = #tpu.dot_dimension_numbers<[1], [0], [0], [1], [0, 0, 1, 1], [], []>} : vector<16x128xbf16>, vector<128x128xbf16>, vector<16x128xf32> -> vector<16x128xf32>
    %c0_21 = arith.constant 0 : index
    %c0_22 = arith.constant 0 : index
    %28 = vector.load %arg9[%c0_21, %c0_22] : memref<1x128xf32, #tpu.memory_space<vmem>>, vector<1x128xf32>
    %29 = vector.broadcast %28 : vector<1x128xf32> to vector<16x128xf32>
    %30 = arith.addf %27, %29 : vector<16x128xf32>
    %31 = arith.truncf %30 : vector<16x128xf32> to vector<16x128xbf16>
    %c0_23 = arith.constant 0 : index
    %c0_24 = arith.constant 0 : index
    %32 = vector.load %arg10[%c0_23, %c0_24] : memref<128x128xbf16, #tpu.memory_space<vmem>>, vector<128x128xbf16>
    %cst_25 = arith.constant dense<0.000000e+00> : vector<16x128xf32>
    %33 = tpu.matmul %31, %32, %cst_25 {dimension_numbers = #tpu.dot_dimension_numbers<[1], [0], [0], [1], [0, 0, 1, 1], [], []>} : vector<16x128xbf16>, vector<128x128xbf16>, vector<16x128xf32> -> vector<16x128xf32>
    %c0_26 = arith.constant 0 : index
    %c0_27 = arith.constant 0 : index
    %34 = vector.load %arg11[%c0_26, %c0_27] : memref<1x128xf32, #tpu.memory_space<vmem>>, vector<1x128xf32>
    %35 = vector.broadcast %34 : vector<1x128xf32> to vector<16x128xf32>
    %36 = arith.addf %33, %35 : vector<16x128xf32>
    %cst_28 = arith.constant 0.000000e+00 : f32
    %37 = vector.broadcast %cst_28 : f32 to vector<16x128xf32>
    %38 = arith.maximumf %36, %37 : vector<16x128xf32>
    %39 = arith.truncf %38 : vector<16x128xf32> to vector<16x128xbf16>
    %c0_29 = arith.constant 0 : index
    %c0_30 = arith.constant 0 : index
    %40 = vector.load %arg12[%c0_29, %c0_30] : memref<128x128xbf16, #tpu.memory_space<vmem>>, vector<128x128xbf16>
    %cst_31 = arith.constant dense<0.000000e+00> : vector<16x128xf32>
    %41 = tpu.matmul %39, %40, %cst_31 {dimension_numbers = #tpu.dot_dimension_numbers<[1], [0], [0], [1], [0, 0, 1, 1], [], []>} : vector<16x128xbf16>, vector<128x128xbf16>, vector<16x128xf32> -> vector<16x128xf32>
    %c0_32 = arith.constant 0 : index
    %c0_33 = arith.constant 0 : index
    %42 = vector.load %arg13[%c0_32, %c0_33] : memref<1x128xf32, #tpu.memory_space<vmem>>, vector<1x128xf32>
    %43 = vector.broadcast %42 : vector<1x128xf32> to vector<16x128xf32>
    %44 = arith.addf %41, %43 : vector<16x128xf32>
    %cst_34 = arith.constant 0.000000e+00 : f32
    %45 = vector.broadcast %cst_34 : f32 to vector<16x128xf32>
    %46 = arith.maximumf %44, %45 : vector<16x128xf32>
    %47 = arith.truncf %46 : vector<16x128xf32> to vector<16x128xbf16>
    %c0_35 = arith.constant 0 : index
    %c0_36 = arith.constant 0 : index
    %48 = vector.load %arg14[%c0_35, %c0_36] : memref<128x128xbf16, #tpu.memory_space<vmem>>, vector<128x128xbf16>
    %cst_37 = arith.constant dense<0.000000e+00> : vector<16x128xf32>
    %49 = tpu.matmul %47, %48, %cst_37 {dimension_numbers = #tpu.dot_dimension_numbers<[1], [0], [0], [1], [0, 0, 1, 1], [], []>} : vector<16x128xbf16>, vector<128x128xbf16>, vector<16x128xf32> -> vector<16x128xf32>
    %c0_38 = arith.constant 0 : index
    %c0_39 = arith.constant 0 : index
    %50 = vector.load %arg15[%c0_38, %c0_39] : memref<1x128xf32, #tpu.memory_space<vmem>>, vector<1x128xf32>
    %51 = vector.broadcast %50 : vector<1x128xf32> to vector<16x128xf32>
    %52 = arith.addf %49, %51 : vector<16x128xf32>
    %cst_40 = arith.constant 0.000000e+00 : f32
    %53 = vector.broadcast %cst_40 : f32 to vector<16x128xf32>
    %54 = arith.maximumf %52, %53 : vector<16x128xf32>
    %55 = arith.truncf %54 : vector<16x128xf32> to vector<16x128xbf16>
    %c0_41 = arith.constant 0 : index
    %c0_42 = arith.constant 0 : index
    %56 = vector.load %arg16[%c0_41, %c0_42] : memref<128x128xbf16, #tpu.memory_space<vmem>>, vector<128x128xbf16>
    %cst_43 = arith.constant dense<0.000000e+00> : vector<16x128xf32>
    %57 = tpu.matmul %55, %56, %cst_43 {dimension_numbers = #tpu.dot_dimension_numbers<[1], [0], [0], [1], [0, 0, 1, 1], [], []>} : vector<16x128xbf16>, vector<128x128xbf16>, vector<16x128xf32> -> vector<16x128xf32>
    %c0_44 = arith.constant 0 : index
    %c0_45 = arith.constant 0 : index
    %58 = vector.load %arg17[%c0_44, %c0_45] : memref<1x128xf32, #tpu.memory_space<vmem>>, vector<1x128xf32>
    %59 = vector.broadcast %58 : vector<1x128xf32> to vector<16x128xf32>
    %60 = arith.addf %57, %59 : vector<16x128xf32>
    %c0_46 = arith.constant 0 : index
    %c0_47 = arith.constant 0 : index
    %61 = vector.load %arg18[%c0_46, %c0_47] : memref<16x128xf32, #tpu.memory_space<vmem>>, vector<16x128xf32>
    tpu.vector_store %arg18[%c0_46, %c0_47], %60 {strides = array<i32>} : memref<16x128xf32, #tpu.memory_space<vmem>>, vector<16x128xf32>,
    %c0_48 = arith.constant 0 : index
    %c0_49 = arith.constant 0 : index
    %62 = vector.load %arg19[%c0_48, %c0_49] : memref<16x128xf32, #tpu.memory_space<vmem>>, vector<16x128xf32>
    tpu.vector_store %arg19[%c0_48, %c0_49], %8 {strides = array<i32>} : memref<16x128xf32, #tpu.memory_space<vmem>>, vector<16x128xf32>,
    %c0_50 = arith.constant 0 : index
    %c0_51 = arith.constant 0 : index
    %63 = vector.load %arg20[%c0_50, %c0_51] : memref<16x128xf32, #tpu.memory_space<vmem>>, vector<16x128xf32>
    tpu.vector_store %arg20[%c0_50, %c0_51], %16 {strides = array<i32>} : memref<16x128xf32, #tpu.memory_space<vmem>>, vector<16x128xf32>,
    %c0_52 = arith.constant 0 : index
    %c0_53 = arith.constant 0 : index
    %64 = vector.load %arg21[%c0_52, %c0_53] : memref<16x128xf32, #tpu.memory_space<vmem>>, vector<16x128xf32>
    tpu.vector_store %arg21[%c0_52, %c0_53], %24 {strides = array<i32>} : memref<16x128xf32, #tpu.memory_space<vmem>>, vector<16x128xf32>,
    %c0_54 = arith.constant 0 : index
    %c0_55 = arith.constant 0 : index
    %65 = vector.load %arg22[%c0_54, %c0_55] : memref<16x128xf32, #tpu.memory_space<vmem>>, vector<16x128xf32>
    tpu.vector_store %arg22[%c0_54, %c0_55], %30 {strides = array<i32>} : memref<16x128xf32, #tpu.memory_space<vmem>>, vector<16x128xf32>,
    return
  }
  func.func @transform_0(%arg0: i32) -> (i32, i32) {
    %c0_i32 = arith.constant 0 : i32
    %c0_i32_0 = arith.constant 0 : i32
    return %arg0, %c0_i32 : i32, i32
  }
  func.func @transform_1(%arg0: i32) -> (i32, i32) {
    %c0_i32 = arith.constant 0 : i32
    %c0_i32_0 = arith.constant 0 : i32
    %c0_i32_1 = arith.constant 0 : i32
    return %c0_i32, %c0_i32_0 : i32, i32
  }
  func.func @transform_2(%arg0: i32) -> (i32, i32) {
    %c0_i32 = arith.constant 0 : i32
    %c0_i32_0 = arith.constant 0 : i32
    %c0_i32_1 = arith.constant 0 : i32
    return %c0_i32, %c0_i32_0 : i32, i32
  }
  func.func @transform_3(%arg0: i32) -> (i32, i32) {
    %c0_i32 = arith.constant 0 : i32
    %c0_i32_0 = arith.constant 0 : i32
    %c0_i32_1 = arith.constant 0 : i32
    return %c0_i32, %c0_i32_0 : i32, i32
  }
  func.func @transform_4(%arg0: i32) -> (i32, i32) {
    %c0_i32 = arith.constant 0 : i32
    %c0_i32_0 = arith.constant 0 : i32
    %c0_i32_1 = arith.constant 0 : i32
    return %c0_i32, %c0_i32_0 : i32, i32
  }
  func.func @transform_5(%arg0: i32) -> (i32, i32) {
    %c0_i32 = arith.constant 0 : i32
    %c0_i32_0 = arith.constant 0 : i32
    %c0_i32_1 = arith.constant 0 : i32
    return %c0_i32, %c0_i32_0 : i32, i32
  }
  func.func @transform_6(%arg0: i32) -> (i32, i32) {
    %c0_i32 = arith.constant 0 : i32
    %c0_i32_0 = arith.constant 0 : i32
    %c0_i32_1 = arith.constant 0 : i32
    return %c0_i32, %c0_i32_0 : i32, i32
  }
  func.func @transform_7(%arg0: i32) -> (i32, i32) {
    %c0_i32 = arith.constant 0 : i32
    %c0_i32_0 = arith.constant 0 : i32
    %c0_i32_1 = arith.constant 0 : i32
    return %c0_i32, %c0_i32_0 : i32, i32
  }
  func.func @transform_8(%arg0: i32) -> (i32, i32) {
    %c0_i32 = arith.constant 0 : i32
    %c0_i32_0 = arith.constant 0 : i32
    %c0_i32_1 = arith.constant 0 : i32
    return %c0_i32, %c0_i32_0 : i32, i32
  }
  func.func @transform_9(%arg0: i32) -> (i32, i32) {
    %c0_i32 = arith.constant 0 : i32
    %c0_i32_0 = arith.constant 0 : i32
    %c0_i32_1 = arith.constant 0 : i32
    return %c0_i32, %c0_i32_0 : i32, i32
  }
  func.func @transform_10(%arg0: i32) -> (i32, i32) {
    %c0_i32 = arith.constant 0 : i32
    %c0_i32_0 = arith.constant 0 : i32
    %c0_i32_1 = arith.constant 0 : i32
    return %c0_i32, %c0_i32_0 : i32, i32
  }
  func.func @transform_11(%arg0: i32) -> (i32, i32) {
    %c0_i32 = arith.constant 0 : i32
    %c0_i32_0 = arith.constant 0 : i32
    %c0_i32_1 = arith.constant 0 : i32
    return %c0_i32, %c0_i32_0 : i32, i32
  }
  func.func @transform_12(%arg0: i32) -> (i32, i32) {
    %c0_i32 = arith.constant 0 : i32
    %c0_i32_0 = arith.constant 0 : i32
    %c0_i32_1 = arith.constant 0 : i32
    return %c0_i32, %c0_i32_0 : i32, i32
  }
  func.func @transform_13(%arg0: i32) -> (i32, i32) {
    %c0_i32 = arith.constant 0 : i32
    %c0_i32_0 = arith.constant 0 : i32
    %c0_i32_1 = arith.constant 0 : i32
    return %c0_i32, %c0_i32_0 : i32, i32
  }
  func.func @transform_14(%arg0: i32) -> (i32, i32) {
    %c0_i32 = arith.constant 0 : i32
    %c0_i32_0 = arith.constant 0 : i32
    %c0_i32_1 = arith.constant 0 : i32
    return %c0_i32, %c0_i32_0 : i32, i32
  }
  func.func @transform_15(%arg0: i32) -> (i32, i32) {
    %c0_i32 = arith.constant 0 : i32
    %c0_i32_0 = arith.constant 0 : i32
    %c0_i32_1 = arith.constant 0 : i32
    return %c0_i32, %c0_i32_0 : i32, i32
  }
  func.func @transform_16(%arg0: i32) -> (i32, i32) {
    %c0_i32 = arith.constant 0 : i32
    %c0_i32_0 = arith.constant 0 : i32
    %c0_i32_1 = arith.constant 0 : i32
    return %c0_i32, %c0_i32_0 : i32, i32
  }
  func.func @transform_17(%arg0: i32) -> (i32, i32) {
    %c0_i32 = arith.constant 0 : i32
    %c0_i32_0 = arith.constant 0 : i32
    return %arg0, %c0_i32 : i32, i32
  }
  func.func @transform_18(%arg0: i32) -> (i32, i32) {
    %c0_i32 = arith.constant 0 : i32
    %c0_i32_0 = arith.constant 0 : i32
    return %arg0, %c0_i32 : i32, i32
  }
  func.func @transform_19(%arg0: i32) -> (i32, i32) {
    %c0_i32 = arith.constant 0 : i32
    %c0_i32_0 = arith.constant 0 : i32
    return %arg0, %c0_i32 : i32, i32
  }
  func.func @transform_20(%arg0: i32) -> (i32, i32) {
    %c0_i32 = arith.constant 0 : i32
    %c0_i32_0 = arith.constant 0 : i32
    return %arg0, %c0_i32 : i32, i32
  }
  func.func @transform_21(%arg0: i32) -> (i32, i32) {
    %c0_i32 = arith.constant 0 : i32
    %c0_i32_0 = arith.constant 0 : i32
    return %arg0, %c0_i32 : i32, i32
  }
}

</mosaic_0001>

<bundles_post_ra>
// kernel: tpu_custom_call.1
= control target key start
LH: loop header
LB: loop body
LE: loop exit
PB: predicated region body
PF: predicated region fallthrough
CT: control target
= control target key end

     0   :  { %s3971_s0 = inlined_call_operand.hbm [shape: f32[48,128], index: 0, kind: input, shape index: {}]   ;;  %s3972_s1 = inlined_call_operand.hbm [shape: bf16[128,128], index: 1, kind: input, shape index: {}]   ;;  %s3973_s2 = inlined_call_operand.vmem [shape: f32[1,128], index: 2, kind: input, shape index: {}]   ;;  %s3974_s3 = inlined_call_operand.hbm [shape: bf16[128,128], index: 3, kind: input, shape index: {}]   ;;  %s3975_s4 = inlined_call_operand.vmem [shape: f32[1,128], index: 4, kind: input, shape index: {}]   ;;  %s3976_s5 = inlined_call_operand.hbm [shape: bf16[128,128], index: 5, kind: input, shape index: {}]   ;;  %s3977_s6 = inlined_call_operand.vmem [shape: f32[1,128], index: 6, kind: input, shape index: {}]   ;;  %s3978_s7 = inlined_call_operand.hbm [shape: bf16[128,128], index: 7, kind: input, shape index: {}]   ;;  %s3979_s8 = inlined_call_operand.vmem [shape: f32[1,128], index: 8, kind: input, shape index: {}]   ;;  %s3980_s9 = inlined_call_operand.hbm [shape: bf16[128,128], index: 9, kind: input, shape index: {}]   ;;  %s3981_s10 = inlined_call_operand.vmem [shape: f32[1,128], index: 10, kind: input, shape index: {}]   ;;  %s3982_s11 = inlined_call_operand.hbm [shape: bf16[128,128], index: 11, kind: input, shape index: {}]   ;;  %s3983_s12 = inlined_call_operand.vmem [shape: f32[1,128], index: 12, kind: input, shape index: {}]   ;;  %s3984_s13 = inlined_call_operand.hbm [shape: bf16[128,128], index: 13, kind: input, shape index: {}]   ;;  %s3985_s14 = inlined_call_operand.vmem [shape: f32[1,128], index: 14, kind: input, shape index: {}]   ;;  %s3986_s15 = inlined_call_operand.hbm [shape: bf16[128,128], index: 15, kind: input, shape index: {}]   ;;  %s3987_s16 = inlined_call_operand.vmem [shape: f32[1,128], index: 16, kind: input, shape index: {}]   ;;  %s3988_s17 = inlined_call_operand.hbm [shape: f32[48,128], index: 17, kind: output, shape index: {0}]   ;;  %s3989_s18 = inlined_call_operand.hbm [shape: f32[48,128], index: 18, kind: output, shape index: {1}]   ;;  %s3990_s19 = inlined_call_operand.hbm [shape: f32[48,128], index: 19, kind: output, shape index: {2}]   ;;  %s3991_s20 = inlined_call_operand.hbm [shape: f32[48,128], index: 20, kind: output, shape index: {3}]   ;;  %s3992_s21 = inlined_call_operand.hbm [shape: f32[48,128], index: 21, kind: output, shape index: {4}]  }
   0x1   :  { %4012 = sst [smem:[#allocation32_spill]] %s3971_s0 }
   0x2   :  { %4013 = sst [smem:[#allocation33_spill]] %s3972_s1 }
   0x3   :  { %4014 = sst [smem:[#allocation34_spill]] %s3973_s2 }
   0x4   :  { %4015 = sst [smem:[#allocation35_spill]] %s3974_s3 }
   0x5   :  { %4016 = sst [smem:[#allocation36_spill]] %s3975_s4 }
   0x6   :  { %4017 = sst [smem:[#allocation37_spill]] %s3976_s5 }
   0x7   :  { %4018 = sst [smem:[#allocation38_spill]] %s3977_s6 }
   0x8   :  { %4019 = sst [smem:[#allocation39_spill]] %s3978_s7 }
   0x9   :  { %4020 = sst [smem:[#allocation40_spill]] %s3979_s8 }
   0xa   :  { %4021 = sst [smem:[#allocation41_spill]] %s3980_s9 }
   0xb   :  { %4022 = sst [smem:[#allocation42_spill]] %s3981_s10 }
   0xc   :  { %4023 = sst [smem:[#allocation43_spill]] %s3982_s11 }
   0xd   :  { %4024 = sst [smem:[#allocation44_spill]] %s3983_s12 }
   0xe   :  { %4025 = sst [smem:[#allocation45_spill]] %s3984_s13 }
   0xf   :  { %4026 = sst [smem:[#allocation46_spill]] %s3985_s14 }
  0x10   :  { %4027 = sst [smem:[#allocation47_spill]] %s3986_s15 }
  0x11   :  { %4028 = sst [smem:[#allocation48_spill]] %s3987_s16 }
  0x12   :  { %4029 = sst [smem:[#allocation49_spill]] %s3988_s17 }
  0x13   :  { %4030 = sst [smem:[#allocation50_spill]] %s3989_s18 }
  0x14   :  { %4031 = sst [smem:[#allocation51_spill]] %s3990_s19 }
  0x15   :  { %4032 = sst [smem:[#allocation52_spill]] %s3991_s20 }
  0x16   :  { %4033 = sst [smem:[#allocation53_spill]] %s3992_s21 }
  0x17   :  { %27 = vsyncpa [#allocation3], 0 }
  0x18   :  { %29 = vsyncpa [#allocation3 + $0x1], 0 }
  0x19   :  { %30 = vsyncpa [#allocation6], 0 }
  0x1a   :  { %31 = vsyncpa [#allocation9], 0 }
  0x1b   :  { %32 = vsyncpa [#allocation12], 0 }
  0x1c   :  { %33 = vsyncpa [#allocation15], 0 }
  0x1d   :  { %34 = vsyncpa [#allocation4], 0 }
  0x1e   :  { %36 = vsyncpa [#allocation4 + $0x1], 0 }
  0x1f   :  { %37 = vsyncpa [#allocation19], 0 }
  0x20   :  { %39 = vsyncpa [#allocation19 + $0x1], 0 }
  0x21   :  { %40 = vsyncpa [#allocation22], 0 }
  0x22   :  { %42 = vsyncpa [#allocation22 + $0x1], 0  ;;  %s3295_s2 = smov 0   ;;  %s3297_s25 = smov 0  }
  0x23   :  { %s3299_s26 = smov 0   ;;  %s3301_s27 = smov 0  }
  0x24 LB: > { %s3163_s3 = smov [#allocation5]   ;;  %s3316_s29 = sadd.s32 4294967295, %s3161_s27   ;;  %s3161_s27 = sphi %s3301_s27, %s4082_s27   ;;  %s3157_s26 = sphi %s3299_s26, %s4081_s26   ;;  %s3153_s25 = sphi %s3297_s25, %s4080_s25   ;;  %s3149_s2 = sphi %s3295_s2, %s4079_s2  }
  0x25   : > { %s557_s28 = sshll.u32 %s3163_s3, 4  ;;  %p2131_p0 = scmp.ge.s32.totalorder %s3161_s27, 1  ;;  %s3321_s28 = int_to_ptr.vmem [resolvable:$true] %s557_s28 }
  0x26   : > { %p4003_p1 = scmp.eq.s32.totalorder %s3316_s29, 0  ;;  %p545_p2 = scmp.lt.s32.totalorder %s3161_s27, 4 }
  0x27   : > { %s3164_s4 = smov [#allocation8]   ;;  %s3165_s22 = smov [#allocation11]  }
  0x28   : > { %p3323_p3 = pnand %p2131_p0, %p545_p2  ;;  %s589_s30 = sshll.u32 %s3164_s4, 4  ;;  %s3335_s30 = int_to_ptr.vmem [resolvable:$true] %s589_s30 }
  0x29   : > { %s621_s23 = sshll.u32 %s3165_s22, 4  ;;  %s4036_s3 = sld [smem:[#allocation33_spill]]  ;;  %s3337_s23 = int_to_ptr.vmem [resolvable:$true] %s621_s23 }
  0x2a   : > { %s4034_s0 = scalar_select %p3323_p3, 1, 0 }
  0x2b   : > { %p2530_p4 = pneg %p3323_p3 }
  0x2d   : > { %p3331_p5 = pnand %p2530_p4, %p4003_p1 }
  0x2f   : > { %s2705_s17 = scalar_lea.hbm %s4036_s3, 1024  ;;  %p3347_p7 = pneg %p3331_p5 }
  0x30   : > { %p2706_p6 = scmp.ne.s32.totalorder %s4036_s3, %s2705_s17  ;;  %p2712_p10 = scmp.lt.u32.totalorder %s2705_s17, %s4036_s3 }
  0x32   : > { %p2708_p8 = pnand %p3347_p7, %p2706_p6 }
  0x34   : > { %p2709_p9 = pneg %p2708_p8 }
  0x36   : > { %p2714_p11 = pnand %p2712_p10, %p2709_p9 }
  0x38   : > { %2717 = shalt.err (!%p2714_p11)
}
  0x39   : > { %s2718_s16 = scalar_lea.vmem %s3321_s28, 1024  ;;  %p2726_p2 = scmp.lt.s32.totalorder %s3321_s28, %s3321_s28 }
  0x3a   : > { %p2719_p12 = scmp.ne.s32.totalorder %s3321_s28, %s2718_s16  ;;  %p2727_p4 = scmp.lt.s32.totalorder %s2718_s16, %s2718_s16 }
  0x3c   : > { %p2721_p13 = pnand %p2719_p12, %p3347_p7  ;;  %p2728_p6 = por %p2727_p4, %p2726_p2 }
  0x3e   : > { %p2722_p0 = pneg %p2721_p13 }
  0x40   : > { %p2729_p8 = pnand %p2728_p6, %p2722_p0 }
  0x42   : > { %2732 = shalt.err (!%p2729_p8)
}
  0x43   : > { %s3166_s21 = smov 64   ;;  %s3167_s17 = smov 4  }
  0x44   : > { %2533 = dma.hbm_to_vmem [thread:$0]  (!%p3331_p5), %s4036_s3, 1024, %s3321_s28, [#allocation6], %s3166_s21, %s3166_s21, %s3167_s17  }
  0x45   : > { %s4038_s20 = sld [smem:[#allocation37_spill]] }
  0x4b   : > { %s2733_s16 = scalar_lea.hbm %s4038_s20, 1024 }
  0x4c   : > { %p2734_p9 = scmp.ne.s32.totalorder %s4038_s20, %s2733_s16  ;;  %p2740_p12 = scmp.lt.u32.totalorder %s2733_s16, %s4038_s20 }
  0x4e   : > { %p2736_p10 = pnand %p2734_p9, %p3347_p7 }
  0x50   : > { %p2737_p11 = pneg %p2736_p10 }
  0x52   : > { %p2742_p13 = pnand %p2740_p12, %p2737_p11 }
  0x54   : > { %2745 = shalt.err (!%p2742_p13)
}
  0x55   : > { %s2746_s28 = scalar_lea.vmem %s3335_s30, 1024  ;;  %p2754_p6 = scmp.lt.s32.totalorder %s3335_s30, %s3335_s30 }
  0x56   : > { %p2747_p0 = scmp.ne.s32.totalorder %s3335_s30, %s2746_s28  ;;  %p2755_p8 = scmp.lt.s32.totalorder %s2746_s28, %s2746_s28 }
  0x58   : > { %p2749_p2 = pnand %p2747_p0, %p3347_p7  ;;  %p2756_p9 = por %p2755_p8, %p2754_p6 }
  0x5a   : > { %p2750_p4 = pneg %p2749_p2 }
  0x5c   : > { %p2757_p10 = pnand %p2756_p9, %p2750_p4 }
  0x5e   : > { %2760 = shalt.err (!%p2757_p10)
}
  0x5f   : > { %2539 = dma.hbm_to_vmem [thread:$0]  (!%p3331_p5), %s4038_s20, 1024, %s3335_s30, [#allocation9], %s3166_s21, %s3166_s21, %s3167_s17  }
  0x60   : > { %s4039_s9 = sld [smem:[#allocation41_spill]] }
  0x66   : > { %s2761_s19 = scalar_lea.hbm %s4039_s9, 1024 }
  0x67   : > { %p2762_p11 = scmp.ne.s32.totalorder %s4039_s9, %s2761_s19  ;;  %p2768_p0 = scmp.lt.u32.totalorder %s2761_s19, %s4039_s9 }
  0x69   : > { %p2764_p12 = pnand %p2762_p11, %p3347_p7 }
  0x6b   : > { %p2765_p13 = pneg %p2764_p12 }
  0x6d   : > { %p2770_p2 = pnand %p2768_p0, %p2765_p13 }
  0x6f   : > { %2773 = shalt.err (!%p2770_p2)
}
  0x70   : > { %s2774_s30 = scalar_lea.vmem %s3337_s23, 1024  ;;  %p2782_p9 = scmp.lt.s32.totalorder %s3337_s23, %s3337_s23 }
  0x71   : > { %p2775_p4 = scmp.ne.s32.totalorder %s3337_s23, %s2774_s30  ;;  %p2783_p10 = scmp.lt.s32.totalorder %s2774_s30, %s2774_s30 }
  0x73   : > { %p2777_p6 = pnand %p2775_p4, %p3347_p7  ;;  %p2784_p11 = por %p2783_p10, %p2782_p9 }
  0x75   : > { %p2778_p8 = pneg %p2777_p6 }
  0x77   : > { %p2785_p12 = pnand %p2784_p11, %p2778_p8 }
  0x79   : > { %2788 = shalt.err (!%p2785_p12)
}
  0x7a   : > { %2545 = dma.hbm_to_vmem [thread:$0]  (!%p3331_p5), %s4039_s9, 1024, %s3337_s23, [#allocation12], %s3166_s21, %s3166_s21, %s3167_s17  }
  0x7b   : > { %s3168_s12 = smov [#allocation14]   ;;  %s3169_s18 = smov [#allocation7]  }
  0x7c   : > { %s653_s14 = sshll.u32 %s3168_s12, 4  ;;  %s573_s19 = sshll.u32 %s3169_s18, 4  ;;  %s654_s14 = int_to_ptr.vmem [resolvable:$true] %s653_s14  ;;  %s574_s19 = int_to_ptr.vmem [resolvable:$true] %s573_s19 }
  0x7d   : > { %s4040_s13 = sld [smem:[#allocation45_spill]] }
  0x83   : > { %s2789_s22 = scalar_lea.hbm %s4040_s13, 1024 }
  0x84   : > { %p2790_p13 = scmp.ne.s32.totalorder %s4040_s13, %s2789_s22  ;;  %p2796_p4 = scmp.lt.u32.totalorder %s2789_s22, %s4040_s13 }
  0x86   : > { %p2792_p0 = pnand %p2790_p13, %p3347_p7 }
  0x88   : > { %p2793_p2 = pneg %p2792_p0 }
  0x8a   : > { %p2798_p6 = pnand %p2796_p4, %p2793_p2 }
  0x8c   : > { %2801 = shalt.err (!%p2798_p6)
}
  0x8d   : > { %s2802_s23 = scalar_lea.vmem %s654_s14, 1024  ;;  %p2810_p11 = scmp.lt.s32.totalorder %s654_s14, %s654_s14 }
  0x8e   : > { %p2803_p8 = scmp.ne.s32.totalorder %s654_s14, %s2802_s23  ;;  %p2811_p12 = scmp.lt.s32.totalorder %s2802_s23, %s2802_s23 }
  0x90   : > { %p2805_p9 = pnand %p2803_p8, %p3347_p7  ;;  %p2812_p1 = por %p2811_p12, %p2810_p11 }
  0x92   : > { %p2806_p10 = pneg %p2805_p9 }
  0x94   : > { %p2813_p3 = pnand %p2812_p1, %p2806_p10 }
  0x96   : > { %2816 = shalt.err (!%p2813_p3)
}
  0x97   : > { %2551 = dma.hbm_to_vmem [thread:$0]  (!%p3331_p5), %s4040_s13, 1024, %s654_s14, [#allocation15], %s3166_s21, %s3166_s21, %s3167_s17  }
  0x98   : > { %s4041_s1 = sld [smem:[#allocation35_spill]] }
  0x9e   : > { %s2817_s24 = scalar_lea.hbm %s4041_s1, 1024 }
  0x9f   : > { %p2818_p1 = scmp.ne.s32.totalorder %s4041_s1, %s2817_s24  ;;  %p2824_p0 = scmp.lt.u32.totalorder %s2817_s24, %s4041_s1 }
  0xa1   : > { %p2820_p3 = pnand %p2818_p1, %p3347_p7 }
  0xa3   : > { %p2821_p13 = pneg %p2820_p3 }
  0xa5   : > { %p2826_p2 = pnand %p2824_p0, %p2821_p13 }
  0xa7   : > { %2829 = shalt.err (!%p2826_p2)
}
  0xa8   : > { %s2830_s23 = scalar_lea.vmem %s574_s19, 1024  ;;  %p2838_p9 = scmp.lt.s32.totalorder %s574_s19, %s574_s19 }
  0xa9   : > { %p2831_p4 = scmp.ne.s32.totalorder %s574_s19, %s2830_s23  ;;  %p2839_p10 = scmp.lt.s32.totalorder %s2830_s23, %s2830_s23 }
  0xab   : > { %p2833_p6 = pnand %p2831_p4, %p3347_p7  ;;  %p2840_p11 = por %p2839_p10, %p2838_p9 }
  0xad   : > { %p2834_p8 = pneg %p2833_p6 }
  0xaf   : > { %p2841_p12 = pnand %p2840_p11, %p2834_p8 }
  0xb1   : > { %2844 = shalt.err (!%p2841_p12)
}
  0xb2   : > { %2536 = dma.hbm_to_vmem [thread:$0]  (!%p3331_p5), %s4041_s1, 1024, %s574_s19, [#allocation6], %s3166_s21, %s3166_s21, %s3167_s17  }
  0xb3   : > { %s3170_s10 = smov [#allocation10]   ;;  %s3171_s18 = smov [#allocation13]  }
  0xb4   : > { %s605_s12 = sshll.u32 %s3170_s10, 4  ;;  %s637_s24 = sshll.u32 %s3171_s18, 4  ;;  %s606_s12 = int_to_ptr.vmem [resolvable:$true] %s605_s12  ;;  %s638_s24 = int_to_ptr.vmem [resolvable:$true] %s637_s24 }
  0xb5   : > { %s4042_s7 = sld [smem:[#allocation39_spill]] }
  0xbb   : > { %s2845_s30 = scalar_lea.hbm %s4042_s7, 1024 }
  0xbc   : > { %p2846_p1 = scmp.ne.s32.totalorder %s4042_s7, %s2845_s30  ;;  %p2852_p0 = scmp.lt.u32.totalorder %s2845_s30, %s4042_s7 }
  0xbe   : > { %p2848_p3 = pnand %p2846_p1, %p3347_p7 }
  0xc0   : > { %p2849_p13 = pneg %p2848_p3 }
  0xc2   : > { %p2854_p2 = pnand %p2852_p0, %p2849_p13 }
  0xc4   : > { %2857 = shalt.err (!%p2854_p2)
}
  0xc5   : > { %s2858_s19 = scalar_lea.vmem %s606_s12, 1024  ;;  %p2866_p9 = scmp.lt.s32.totalorder %s606_s12, %s606_s12 }
  0xc6   : > { %p2859_p4 = scmp.ne.s32.totalorder %s606_s12, %s2858_s19  ;;  %p2867_p10 = scmp.lt.s32.totalorder %s2858_s19, %s2858_s19 }
  0xc8   : > { %p2861_p6 = pnand %p2859_p4, %p3347_p7  ;;  %p2868_p11 = por %p2867_p10, %p2866_p9 }
  0xca   : > { %p2862_p8 = pneg %p2861_p6 }
  0xcc   : > { %p2869_p12 = pnand %p2868_p11, %p2862_p8 }
  0xce   : > { %2872 = shalt.err (!%p2869_p12)
}
  0xcf   : > { %2542 = dma.hbm_to_vmem [thread:$0]  (!%p3331_p5), %s4042_s7, 1024, %s606_s12, [#allocation9], %s3166_s21, %s3166_s21, %s3167_s17  }
  0xd0   : > { %s4043_s11 = sld [smem:[#allocation43_spill]] }
  0xd6   : > { %s2873_s22 = scalar_lea.hbm %s4043_s11, 1024 }
  0xd7   : > { %p2874_p1 = scmp.ne.s32.totalorder %s4043_s11, %s2873_s22  ;;  %p2880_p0 = scmp.lt.u32.totalorder %s2873_s22, %s4043_s11 }
  0xd9   : > { %p2876_p3 = pnand %p2874_p1, %p3347_p7 }
  0xdb   : > { %p2877_p13 = pneg %p2876_p3 }
  0xdd   : > { %p2882_p2 = pnand %p2880_p0, %p2877_p13 }
  0xdf   : > { %2885 = shalt.err (!%p2882_p2)
}
  0xe0   : > { %s2886_s14 = scalar_lea.vmem %s638_s24, 1024  ;;  %p2894_p9 = scmp.lt.s32.totalorder %s638_s24, %s638_s24 }
  0xe1   : > { %p2887_p4 = scmp.ne.s32.totalorder %s638_s24, %s2886_s14  ;;  %p2895_p10 = scmp.lt.s32.totalorder %s2886_s14, %s2886_s14 }
  0xe3   : > { %p2889_p6 = pnand %p2887_p4, %p3347_p7  ;;  %p2896_p11 = por %p2895_p10, %p2894_p9 }
  0xe5   : > { %p2890_p8 = pneg %p2889_p6 }
  0xe7   : > { %p2897_p12 = pnand %p2896_p11, %p2890_p8 }
  0xe9   : > { %2900 = shalt.err (!%p2897_p12)
}
  0xea   : > { %2548 = dma.hbm_to_vmem [thread:$0]  (!%p3331_p5), %s4043_s11, 1024, %s638_s24, [#allocation12], %s3166_s21, %s3166_s21, %s3167_s17  }
  0xeb   : > { %s3172_s9 = smov [#allocation16]   ;;  %s4044_s15 = sld [smem:[#allocation47_spill]] }
  0xec   : > { %s669_s3 = sshll.u32 %s3172_s9, 4  ;;  %s670_s3 = int_to_ptr.vmem [resolvable:$true] %s669_s3 }
  0xf1   : > { %s2901_s22 = scalar_lea.hbm %s4044_s15, 1024 }
  0xf2   : > { %p2902_p1 = scmp.ne.s32.totalorder %s4044_s15, %s2901_s22  ;;  %p2908_p0 = scmp.lt.u32.totalorder %s2901_s22, %s4044_s15 }
  0xf4   : > { %p2904_p3 = pnand %p2902_p1, %p3347_p7 }
  0xf6   : > { %p2905_p13 = pneg %p2904_p3 }
  0xf8   : > { %p2910_p2 = pnand %p2908_p0, %p2905_p13 }
  0xfa   : > { %2913 = shalt.err (!%p2910_p2)
}
  0xfb   : > { %s2914_s24 = scalar_lea.vmem %s670_s3, 1024  ;;  %p2922_p9 = scmp.lt.s32.totalorder %s670_s3, %s670_s3 }
  0xfc   : > { %p2915_p4 = scmp.ne.s32.totalorder %s670_s3, %s2914_s24  ;;  %p2923_p10 = scmp.lt.s32.totalorder %s2914_s24, %s2914_s24 }
  0xfe   : > { %p2917_p6 = pnand %p2915_p4, %p3347_p7  ;;  %p2924_p11 = por %p2923_p10, %p2922_p9 }
 0x100   : > { %p2918_p8 = pneg %p2917_p6 }
 0x102   : > { %p2925_p12 = pnand %p2924_p11, %p2918_p8 }
 0x104   : > { %2928 = shalt.err (!%p2925_p12)
}
 0x105   : > { %2554 = dma.hbm_to_vmem [thread:$0]  (!%p3331_p5), %s4044_s15, 1024, %s670_s3, [#allocation15], %s3166_s21, %s3166_s21, %s3167_s17  }
 0x106   : > { %s4005_s5 = sadd.s32 4294967294, %s3161_s27   ;;  %s3530_s4 = sadd.s32 1, %s3161_s27  }
 0x107   : > { %s52_s19 = ssub.s32 %s3161_s27, %s3530_s4  ;;  %s55_s9 = sadd.s32 1, %s3157_s26 }
 0x108   : > { %p53_p7 = scmp.eq.s32.totalorder %s52_s19, 0  ;;  %p62_p1 = scmp.ne.s32.totalorder %s3157_s26, %s3153_s25 }
 0x109   : > { %p63_p3 = scmp.eq.s32.totalorder %s3161_s27, 0  ;;  %p68_p13 = scmp.ne.s32.totalorder %s3153_s25, %s3149_s2 }
 0x10a   : > { %s3541_s10 = scalar_select %p53_p7, %s3157_s26, %s55_s9  }
 0x10b   : > { %p3543_p0 = por %p63_p3, %p62_p1  ;;  %p4046_p2 = scmp.eq.s32.totalorder %s3316_s29, 0 }
 0x10c   : > { %p428_p4 = scmp.eq.s32.totalorder %s3316_s29, 2  ;;  %p434_p6 = scmp.eq.s32.totalorder %s4005_s5, 2 }
 0x10d   : > { %p3549_p5 = por %p4046_p2, %p68_p13  ;;  %p2583_p8 = scmp.lt.s32.totalorder %s3161_s27, 3 }
 0x10e   : > { %s686_s17 = sand.u32 1, %s3157_s26   ;;  %p3558_p9 = por %p428_p4, %p62_p1 }
 0x10f   : > { %p3562_p10 = por %p434_p6, %p68_p13  ;;  %s2141_s16 = sshll.u32 %s686_s17, 4 }
 0x110   : > { %s4048_s3 = scalar_select %p3558_p9, 1, 0 }
 0x111   : > { %s4049_s22 = scalar_select %p3562_p10, 1, 0 }
 0x112   : > { %s2248_s30 = sshll.u32 %s3161_s27, 8  ;;  %s4050_s24 = sld [smem:[#allocation32_spill]] }
 0x113   : > { %s690_s12 = scalar_lea.vmem [#allocation2], %s2141_s16  ;;  %p3576_p11 = pnand %p2583_p8, %p3543_p0 }
 0x114   : > { %s697_s19 = sshll.u32 %s690_s12, 4  ;;  %s3580_s5 = scalar_lea.sflag [#allocation3], %s686_s17  ;;  %s3572_s19 = int_to_ptr.vmem [resolvable:$true] %s697_s19 }
 0x115   : > { %p2931_p7 = pneg %p3576_p11 }
 0x118   : > { %s3570_s14 = scalar_lea.hbm %s4050_s24, %s2248_s30  ;;  %s2934_s18 = scalar_lea.hbm %s4050_s24, 768 }
 0x119   : > { %s2929_s28 = scalar_lea.hbm %s3570_s14, 256  ;;  %p2935_p13 = scmp.lt.u32.totalorder %s3570_s14, %s4050_s24 }
 0x11a   : > { %p2930_p12 = scmp.ne.s32.totalorder %s3570_s14, %s2929_s28  ;;  %p2936_p0 = scmp.lt.u32.totalorder %s2934_s18, %s2929_s28 }
 0x11b   : > { %p2938_p4 = scmp.lt.u32.totalorder %s2929_s28, %s3570_s14 }
 0x11c   : > { %p2932_p1 = pnand %p2931_p7, %p2930_p12  ;;  %p2937_p2 = por %p2936_p0, %p2935_p13 }
 0x11e   : > { %p2933_p3 = pneg %p2932_p1  ;;  %p2939_p6 = por %p2938_p4, %p2937_p2 }
 0x120   : > { %p2940_p8 = pnand %p2939_p6, %p2933_p3 }
 0x122   : > { %2943 = shalt.err (!%p2940_p8)
}
 0x123   : > { %s2944_s17 = scalar_lea.vmem %s3572_s19, 256  ;;  %s3173_s16 = smov [#allocation2]  }
 0x124   : > { %p2945_p12 = scmp.ne.s32.totalorder %s3572_s19, %s2944_s17  ;;  %s2949_s30 = sshll.u32 %s3173_s16, 4  ;;  %s2950_s30 = int_to_ptr.vmem [resolvable:$false] %s2949_s30 }
 0x125   : > { %s2951_s23 = scalar_lea.vmem %s2950_s30, 512  ;;  %p2952_p9 = scmp.lt.s32.totalorder %s3572_s19, %s2950_s30 }
 0x126   : > { %p2947_p1 = pnand %p2945_p12, %p2931_p7  ;;  %p2953_p13 = scmp.lt.s32.totalorder %s2951_s23, %s2944_s17 }
 0x128   : > { %p2948_p10 = pneg %p2947_p1  ;;  %p2954_p0 = por %p2953_p13, %p2952_p9 }
 0x12a   : > { %p2955_p2 = pnand %p2954_p0, %p2948_p10 }
 0x12c   : > { %2958 = shalt.err (!%p2955_p2)
}
 0x12d   : > { %s3174_s28 = smov 128   ;;  %s3175_s18 = smov 8  }
 0x12e   : > { %2558 = dma.hbm_to_vmem [thread:$0]  (!%p3576_p11), %s3570_s14, 256, %s3572_s19, %s3580_s5, %s3174_s28, %s3174_s28, %s3175_s18  }
 0x12f   : > { %p4052_p7 = scmp.ne.s32.totalorder %s4034_s0, 0 }
 0x130   : > { %s3611_s12 = sand.u32 (!%p4052_p7), 1, %s3153_s25  }
 0x131   : > { %709 = sbr.rel (%p4052_p7) target bundleno = 2128 (0x850), region = 88  ;;  %s3614_s17 = sshll.u32 (!%p4052_p7), %s3611_s12, 4 }
 0x132   : > { %s712_s16 = scalar_lea.sflag (!%p4052_p7), [#allocation3], %s3611_s12  ;;  %s715_s30 = scalar_lea.vmem (!%p4052_p7), [#allocation2], %s3614_s17 }
 0x138   : > { %3116 = dma.done.wait (%p3549_p5), %s712_s16, 256  }
 0x139   : > { %3118 = vsyncadd (%p3549_p5), %s712_s16, 4294967040  ;;  %p4053_p9 = scmp.eq.s32.totalorder %s3316_s29, 0 }
 0x13b   : > { %3120 = dma.done.wait (%p4053_p9), [#allocation6], 2048   ;;  %p4054_p10 = pmov %p4053_p9 }
 0x13c   : > { %p4055_p11 = pmov %p4053_p9 }
 0x13d   : > { %3122 = vsyncadd (%p4054_p10), [#allocation6], 4294965248 }
 0x13e   : > { %3124 = dma.done.wait (%p4055_p11), [#allocation9], 2048   ;;  %p4056_p3 = pmov %p4053_p9 }
 0x140   : > { %3126 = vsyncadd (%p4056_p3), [#allocation9], 4294965248  ;;  %p4057_p4 = pmov %p4056_p3 }
 0x141   : > { %p4058_p6 = pmov %p4056_p3 }
 0x142   : > { %3128 = dma.done.wait (%p4057_p4), [#allocation12], 2048  }
 0x143   : > { %3130 = vsyncadd (%p4058_p6), [#allocation12], 4294965248  ;;  %p4059_p5 = pmov %p4056_p3 }
 0x144   : > { %p4060_p8 = pmov %p4056_p3 }
 0x145   : > { %3132 = dma.done.wait (%p4059_p5), [#allocation15], 2048  }
 0x146   : > { %3134 = vsyncadd (%p4060_p8), [#allocation15], 4294965248  ;;  %v3176_v0 = vmov 0.0   ;;  %vm3177_vm0 = vmmov 0   ;;  %v2641_v1 = vld [vmem:[#allocation5] sm:$0xff]   ;;  %v2642_v2 = vld [vmem:[#allocation5 + $0x8] sm:$0xff]  }
 0x147   : > { %2326 = vmatprep.subr.bf16.mxu0 %v3176_v0  ;;  %2342 = vmatprep.mubr.msk.bf16.mxu0 %vm3177_vm0, %v3176_v0  ;;  %v2643_v3 = vld [vmem:[#allocation5 + $0x10] sm:$0xff]   ;;  %v2649_v4 = vld [vmem:[#allocation7] sm:$0xff]   ;;  %v2644_v5 = vld [vmem:[#allocation5 + $0x18] sm:$0xff]   ;;  %s4061_s21 = sld [smem:[#allocation34_spill]]  ;;  %s3676_s14 = scalar_lea.vmem [#allocation18], %s3614_s17 }
 0x148   : > { %2346 = vmatprep.subr.bf16.mxu1 %v3176_v0  ;;  %2362 = vmatprep.mubr.msk.bf16.mxu1 %vm3177_vm0, %v3176_v0  ;;  %v2650_v6 = vld [vmem:[#allocation7 + $0x8] sm:$0xff]   ;;  %v2645_v7 = vld [vmem:[#allocation5 + $0x20] sm:$0xff]   ;;  %v2651_v8 = vld [vmem:[#allocation7 + $0x10] sm:$0xff]   ;;  %s4062_s23 = sld [smem:[#allocation36_spill]]  ;;  %s3694_s28 = scalar_lea.vmem [#allocation20], %s3614_s17 }
 0x149   : > { %2327 = vmatpush3.bf16.msra.mxu0 %v2641_v1  ;;  %2347 = vmatpush3.bf16.msra.mxu1 %v2649_v4  ;;  %v2646_v9 = vld [vmem:[#allocation5 + $0x28] sm:$0xff]   ;;  %v2652_v10 = vld [vmem:[#allocation7 + $0x18] sm:$0xff]   ;;  %v2647_v11 = vld [vmem:[#allocation5 + $0x30] sm:$0xff]   ;;  %s4063_s6 = sld [smem:[#allocation38_spill]]  ;;  %s4064_s8 = sld [smem:[#allocation40_spill]] }
 0x14a   : > { %2328 = vmatprep.subr.bf16.mxu0 %v3176_v0  ;;  %2348 = vmatprep.subr.bf16.mxu1 %v3176_v0  ;;  %v2653_v12 = vld [vmem:[#allocation7 + $0x20] sm:$0xff]   ;;  %v2648_v13 = vld [vmem:[#allocation5 + $0x38] sm:$0xff]   ;;  %v2654_v16 = vld [vmem:[#allocation7 + $0x28] sm:$0xff]   ;;  %s4066_s0 = sld [smem:[#allocation44_spill]]  ;;  %s4067_s9 = sld [smem:[#allocation46_spill]] }
 0x14b   : > { %v833_v14 = vld [vmem:[%s715_s30] sm:$0xff]  ;;  %v834_v15 = vld [vmem:[%s715_s30 + $0x8] sm:$0xff]  ;;  %s3712_s30 = scalar_lea.vmem [#allocation21], %s3614_s17  ;;  %s1827_s18 = sshll.u32 %s3694_s28, 4  ;;  %s3768_s18 = int_to_ptr.vmem [resolvable:$true] %s1827_s18 }
 0x14c   : > { %v835_v17 = vpack.c.bf16 %v834_v15, %v833_v14  ;;  %v2655_v18 = vld [vmem:[#allocation7 + $0x30] sm:$0xff]   ;;  %v2656_v19 = vld [vmem:[#allocation7 + $0x38] sm:$0xff]   ;;  %v2657_v20 = vld [vmem:[#allocation8] sm:$0xff]   ;;  %s1843_s16 = sshll.u32 %s3712_s30, 4  ;;  %s3775_s19 = sshll.u32 %s3316_s29, 8  ;;  %s3770_s16 = int_to_ptr.vmem [resolvable:$true] %s1843_s16 }
 0x14d   : > { %2329 = vmatpush3.bf16.msra.mxu0 %v2642_v2  ;;  %2349 = vmatpush3.bf16.msra.mxu1 %v2650_v6  ;;  %v2658_v21 = vld [vmem:[#allocation8 + $0x8] sm:$0xff]   ;;  %v2659_v22 = vld [vmem:[#allocation8 + $0x10] sm:$0xff]   ;;  %v2660_v23 = vld [vmem:[#allocation8 + $0x18] sm:$0xff]   ;;  %p4069_p1 = scmp.ne.s32.totalorder %s4048_s3, 0  ;;  %s3178_s7 = smov [#allocation18]  }
 0x14e   : > { %2330 = vmatprep.subr.bf16.mxu0 %v3176_v0  ;;  %2350 = vmatprep.subr.bf16.mxu1 %v3176_v0  ;;  %v2661_v24 = vld [vmem:[#allocation8 + $0x20] sm:$0xff]   ;;  %v2662_v25 = vld [vmem:[#allocation8 + $0x28] sm:$0xff]   ;;  %v2663_v36 = vld [vmem:[#allocation8 + $0x30] sm:$0xff]  }
 0x14f   : > { %v2159_v26 = vld [vmem:[%s4061_s21] ss:$0 sm:$0xff]  ;;  %v2664_v37 = vld [vmem:[#allocation8 + $0x38] sm:$0xff]   ;;  %v2666_v39 = vld [vmem:[#allocation10 + $0x8] sm:$0xff]   ;;  %s3730_s21 = scalar_lea.vmem [#allocation23], %s3614_s17 }
 0x150   : > { %v2665_v38 = vld [vmem:[#allocation10] sm:$0xff]   ;;  %v2667_v40 = vld [vmem:[#allocation10 + $0x10] sm:$0xff]   ;;  %v2668_v41 = vld [vmem:[#allocation10 + $0x18] sm:$0xff]  }
 0x151   : > { %2331 = vmatpush3.bf16.msra.mxu0 %v2643_v3  ;;  %2351 = vmatpush3.bf16.msra.mxu1 %v2651_v8  ;;  %v2669_v42 = vld [vmem:[#allocation10 + $0x20] sm:$0xff]   ;;  %v2670_v43 = vld [vmem:[#allocation10 + $0x28] sm:$0xff]   ;;  %v2671_v54 = vld [vmem:[#allocation10 + $0x30] sm:$0xff]  }
 0x152   : > { %2332 = vmatprep.subr.bf16.mxu0 %v3176_v0  ;;  %2352 = vmatprep.subr.bf16.mxu1 %v3176_v0  ;;  %v2168_v44 = vld [vmem:[%s4062_s23] ss:$0 sm:$0xff]  ;;  %v2672_v55 = vld [vmem:[#allocation10 + $0x38] sm:$0xff]   ;;  %v2674_v57 = vld [vmem:[#allocation11 + $0x8] sm:$0xff]   ;;  %s4065_s23 = sld [smem:[#allocation42_spill]] }
 0x153   : > { %v2673_v56 = vld [vmem:[#allocation11] sm:$0xff]   ;;  %v2675_v58 = vld [vmem:[#allocation11 + $0x10] sm:$0xff]   ;;  %v2676_v59 = vld [vmem:[#allocation11 + $0x18] sm:$0xff]  }
 0x154   : > { %v2677_v60 = vld [vmem:[#allocation11 + $0x20] sm:$0xff]   ;;  %v2678_v61 = vld [vmem:[#allocation11 + $0x28] sm:$0xff]   ;;  %v2684_v14 = vld [vmem:[#allocation13 + $0x18] sm:$0xff]  }
 0x155   : > { %2333 = vmatpush3.bf16.msra.mxu0 %v2644_v5  ;;  %2353 = vmatpush3.bf16.msra.mxu1 %v2652_v10  ;;  %v2177_v62 = vld [vmem:[%s4063_s6] ss:$0 sm:$0xff]  ;;  %v2680_v10 = vld [vmem:[#allocation11 + $0x38] sm:$0xff]   ;;  %s4068_s6 = sld [smem:[#allocation50_spill]] }
 0x156   : > { %2334 = vmatprep.subr.bf16.mxu0 %v3176_v0  ;;  %2354 = vmatprep.subr.bf16.mxu1 %v3176_v0  ;;  %v2685_v15 = vld [vmem:[#allocation13 + $0x20] sm:$0xff]  }
 0x159   : > { %2335 = vmatpush3.bf16.msra.mxu0 %v2645_v7  ;;  %2355 = vmatpush3.bf16.msra.mxu1 %v2653_v12  ;;  %v2682_v12 = vld [vmem:[#allocation13 + $0x8] sm:$0xff]  }
 0x15a   : > { %2336 = vmatprep.subr.bf16.mxu0 %v3176_v0  ;;  %2356 = vmatprep.subr.bf16.mxu1 %v3176_v0 }
 0x15d   : > { %2337 = vmatpush3.bf16.msra.mxu0 %v2646_v9  ;;  %2357 = vmatpush3.bf16.msra.mxu1 %v2654_v16  ;;  %v2679_v9 = vld [vmem:[#allocation11 + $0x30] sm:$0xff]   ;;  %v2686_v16 = vld [vmem:[#allocation13 + $0x28] sm:$0xff]  }
 0x15e   : > { %2338 = vmatprep.subr.bf16.mxu0 %v3176_v0  ;;  %2358 = vmatprep.subr.bf16.mxu1 %v3176_v0 }
 0x161   : > { %2339 = vmatpush3.bf16.msra.mxu0 %v2647_v11  ;;  %2359 = vmatpush3.bf16.msra.mxu1 %v2655_v18  ;;  %v2681_v11 = vld [vmem:[#allocation13] sm:$0xff]  }
 0x162   : > { %2340 = vmatprep.subr.bf16.mxu0 %v3176_v0  ;;  %2360 = vmatprep.subr.bf16.mxu1 %v3176_v0 }
 0x165   : > { %2341 = vmatpush3.bf16.msra.mxu0 %v2648_v13  ;;  %2361 = vmatpush3.bf16.msra.mxu1 %v2656_v19  ;;  %v2683_v13 = vld [vmem:[#allocation13 + $0x10] sm:$0xff]  }
 0x166   : > { %2366 = vmatprep.subr.bf16.mxu0 %v3176_v0  ;;  %2386 = vmatprep.subr.bf16.mxu1 %v3176_v0 }
 0x168   : > { %2343 = vmatmul.mubr.bf16.vlgmr.msra.gmra.mrb[0].mxu0 %v835_v17  ;;  %v2186_v17 = vld [vmem:[%s4064_s8] ss:$0 sm:$0xff]  ;;  %s2963_s8 = sshll.u32 %s3178_s7, 4  ;;  %s2964_s8 = int_to_ptr.vmem [resolvable:$false] %s2963_s8 }
 0x169   : > { %2382 = vmatprep.mubr.msk.bf16.mxu0 %vm3177_vm0, %v3176_v0  ;;  %2367 = vmatpush3.bf16.msra.mxu0 %v2657_v20  ;;  %s2965_s5 = scalar_lea.vmem %s2964_s8, 512 }
 0x16a   : > { %2368 = vmatprep.subr.bf16.mxu0 %v3176_v0 }
 0x16d   : > { %2369 = vmatpush3.bf16.msra.mxu0 %v2658_v21 }
 0x16e   : > { %2370 = vmatprep.subr.bf16.mxu0 %v3176_v0 }
 0x171   : > { %2371 = vmatpush3.bf16.msra.mxu0 %v2659_v22 }
 0x172   : > { %2372 = vmatprep.subr.bf16.mxu0 %v3176_v0 }
 0x175   : > { %2373 = vmatpush3.bf16.msra.mxu0 %v2660_v23 }
 0x176   : > { %2374 = vmatprep.subr.bf16.mxu0 %v3176_v0 }
 0x179   : > { %2375 = vmatpush3.bf16.msra.mxu0 %v2661_v24 }
 0x17a   : > { %2376 = vmatprep.subr.bf16.mxu0 %v3176_v0 }
 0x17d   : > { %2377 = vmatpush3.bf16.msra.mxu0 %v2662_v25  ;;  %v2687_v25 = vld [vmem:[#allocation13 + $0x30] sm:$0xff]  }
 0x17e   : > { %2378 = vmatprep.subr.bf16.mxu0 %v3176_v0 }
 0x181   : > { %2379 = vmatpush3.bf16.msra.mxu0 %v2663_v36 }
 0x182   : > { %2380 = vmatprep.subr.bf16.mxu0 %v3176_v0 }
 0x185   : > { %2381 = vmatpush3.bf16.msra.mxu0 %v2664_v37 }
 0x186   : > { %2406 = vmatprep.subr.bf16.mxu0 %v3176_v0 }
 0x23b   : > { %v941_v27 = vpop.f32.mrb[0].mxu0 }
 0x23c   : > { %v942_v28 = vadd.f32 %v2159_v26, %v941_v27  ;;  %v2344_v29 = vpop.f32.mrb[1].mxu0  ;;  %v2689_v27 = vld [vmem:[#allocation14] sm:$0xff]  }
 0x23d   : > { %v944_v30 = vpop.f32.mrb[2].mxu0  ;;  %v2691_v29 = vld [vmem:[#allocation14 + $0x10] sm:$0xff]  }
 0x23e   : > { %v948_v31 = vmax.f32 %v942_v28, 0.0  ;;  %v945_v32 = vadd.f32 %v2159_v26, %v944_v30  ;;  %v2345_v33 = vpop.f32.mrb[3].mxu0  ;;  %v2688_v26 = vld [vmem:[#allocation13 + $0x38] sm:$0xff]   ;;  %v2690_v28 = vld [vmem:[#allocation14 + $0x8] sm:$0xff]  }
 0x23f   : > { %v2692_v30 = vld [vmem:[#allocation14 + $0x18] sm:$0xff]   ;;  %v2195_v33 = vld [vmem:[%s4065_s23] ss:$0 sm:$0xff]  ;;  %s1811_s23 = sshll.u32 %s3676_s14, 4  ;;  %s3766_s23 = int_to_ptr.vmem [resolvable:$true] %s1811_s23 }
 0x240   : > { %1753 = vst [vmem:[%s3676_s14] sm:$0xff] %v948_v31  ;;  %v949_v34 = vmax.f32 %v945_v32, 0.0  ;;  %v2694_v32 = vld [vmem:[#allocation14 + $0x28] sm:$0xff]   ;;  %p2966_p2 = scmp.lt.s32.totalorder %s3766_s23, %s2964_s8 }
 0x242   : > { %v950_v35 = vpack.c.bf16 %v949_v34, %v948_v31  ;;  %1754 = vst [vmem:[%s3676_s14 + $0x8] sm:$0xff] %v949_v34  ;;  %v2693_v31 = vld [vmem:[#allocation14 + $0x20] sm:$0xff]   ;;  %s3781_s14 = scalar_lea.hbm %s4068_s6, %s3775_s19 }
 0x244   : > { %2363 = vmatmul.mubr.bf16.vlgmr.msra.gmra.mrb[0].mxu1 %v950_v35 }
 0x245   : > { %2402 = vmatprep.mubr.msk.bf16.mxu1 %vm3177_vm0, %v3176_v0  ;;  %2387 = vmatpush3.bf16.msra.mxu1 %v2665_v38 }
 0x246   : > { %2388 = vmatprep.subr.bf16.mxu1 %v3176_v0 }
 0x249   : > { %2389 = vmatpush3.bf16.msra.mxu1 %v2666_v39 }
 0x24a   : > { %2390 = vmatprep.subr.bf16.mxu1 %v3176_v0 }
 0x24d   : > { %2391 = vmatpush3.bf16.msra.mxu1 %v2667_v40 }
 0x24e   : > { %2392 = vmatprep.subr.bf16.mxu1 %v3176_v0 }
 0x251   : > { %2393 = vmatpush3.bf16.msra.mxu1 %v2668_v41 }
 0x252   : > { %2394 = vmatprep.subr.bf16.mxu1 %v3176_v0 }
 0x255   : > { %2395 = vmatpush3.bf16.msra.mxu1 %v2669_v42 }
 0x256   : > { %2396 = vmatprep.subr.bf16.mxu1 %v3176_v0 }
 0x259   : > { %2397 = vmatpush3.bf16.msra.mxu1 %v2670_v43  ;;  %v2695_v43 = vld [vmem:[#allocation14 + $0x30] sm:$0xff]  }
 0x25a   : > { %2398 = vmatprep.subr.bf16.mxu1 %v3176_v0 }
 0x25d   : > { %2399 = vmatpush3.bf16.msra.mxu1 %v2671_v54 }
 0x25e   : > { %2400 = vmatprep.subr.bf16.mxu1 %v3176_v0 }
 0x261   : > { %2401 = vmatpush3.bf16.msra.mxu1 %v2672_v55 }
 0x262   : > { %2426 = vmatprep.subr.bf16.mxu1 %v3176_v0 }
 0x317   : > { %v1056_v45 = vpop.f32.mrb[0].mxu1 }
 0x318   : > { %v1057_v46 = vadd.f32 %v2168_v44, %v1056_v45  ;;  %v2364_v47 = vpop.f32.mrb[1].mxu1  ;;  %v2697_v45 = vld [vmem:[#allocation16] sm:$0xff]  }
 0x319   : > { %v1059_v48 = vpop.f32.mrb[2].mxu1  ;;  %v2699_v47 = vld [vmem:[#allocation16 + $0x10] sm:$0xff]  }
 0x31a   : > { %v1063_v49 = vmax.f32 %v1057_v46, 0.0  ;;  %v1060_v50 = vadd.f32 %v2168_v44, %v1059_v48  ;;  %v2365_v51 = vpop.f32.mrb[3].mxu1  ;;  %v2696_v44 = vld [vmem:[#allocation14 + $0x38] sm:$0xff]   ;;  %v2698_v46 = vld [vmem:[#allocation16 + $0x8] sm:$0xff]  }
 0x31b   : > { %v2700_v48 = vld [vmem:[#allocation16 + $0x18] sm:$0xff]   ;;  %v2204_v51 = vld [vmem:[%s4066_s0] ss:$0 sm:$0xff]  ;;  %s4008_s0 = sand.u32 1, %s3316_s29  }
 0x31c   : > { %1755 = vst [vmem:[%s3694_s28] sm:$0xff] %v1063_v49  ;;  %v1064_v52 = vmax.f32 %v1060_v50, 0.0  ;;  %v2702_v50 = vld [vmem:[#allocation16 + $0x28] sm:$0xff]  }
 0x31e   : > { %v1065_v53 = vpack.c.bf16 %v1064_v52, %v1063_v49  ;;  %1756 = vst [vmem:[%s3694_s28 + $0x8] sm:$0xff] %v1064_v52  ;;  %v2701_v49 = vld [vmem:[#allocation16 + $0x20] sm:$0xff]   ;;  %s3785_s28 = scalar_lea.sflag [#allocation19], %s4008_s0 }
 0x320   : > { %2383 = vmatmul.mubr.bf16.vlgmr.msra.gmra.mrb[4].mxu0 %v1065_v53 }
 0x321   : > { %2422 = vmatprep.mubr.msk.bf16.mxu0 %vm3177_vm0, %v3176_v0  ;;  %2407 = vmatpush3.bf16.msra.mxu0 %v2673_v56 }
 0x322   : > { %2408 = vmatprep.subr.bf16.mxu0 %v3176_v0 }
 0x325   : > { %2409 = vmatpush3.bf16.msra.mxu0 %v2674_v57 }
 0x326   : > { %2410 = vmatprep.subr.bf16.mxu0 %v3176_v0 }
 0x329   : > { %2411 = vmatpush3.bf16.msra.mxu0 %v2675_v58 }
 0x32a   : > { %2412 = vmatprep.subr.bf16.mxu0 %v3176_v0 }
 0x32d   : > { %2413 = vmatpush3.bf16.msra.mxu0 %v2676_v59 }
 0x32e   : > { %2414 = vmatprep.subr.bf16.mxu0 %v3176_v0 }
 0x331   : > { %2415 = vmatpush3.bf16.msra.mxu0 %v2677_v60 }
 0x332   : > { %2416 = vmatprep.subr.bf16.mxu0 %v3176_v0 }
 0x335   : > { %2417 = vmatpush3.bf16.msra.mxu0 %v2678_v61  ;;  %v2703_v61 = vld [vmem:[#allocation16 + $0x30] sm:$0xff]  }
 0x336   : > { %2418 = vmatprep.subr.bf16.mxu0 %v3176_v0 }
 0x339   : > { %2419 = vmatpush3.bf16.msra.mxu0 %v2679_v9 }
 0x33a   : > { %2420 = vmatprep.subr.bf16.mxu0 %v3176_v0 }
 0x33d   : > { %2421 = vmatpush3.bf16.msra.mxu0 %v2680_v10 }
 0x33e   : > { %2446 = vmatprep.subr.bf16.mxu0 %v3176_v0 }
 0x3f3   : > { %v1171_v63 = vpop.f32.mrb[4].mxu0 }
 0x3f4   : > { %v1172_v1 = vadd.f32 %v2177_v62, %v1171_v63  ;;  %v2384_v2 = vpop.f32.mrb[5].mxu0  ;;  %v2213_v63 = vld [vmem:[%s4067_s9] ss:$0 sm:$0xff] }
 0x3f5   : > { %v1174_v3 = vpop.f32.mrb[6].mxu0 }
 0x3f6   : > { %v1178_v4 = vmax.f32 %v1172_v1, 0.0  ;;  %v1175_v5 = vadd.f32 %v2177_v62, %v1174_v3  ;;  %v2385_v6 = vpop.f32.mrb[7].mxu0  ;;  %v2704_v62 = vld [vmem:[#allocation16 + $0x38] sm:$0xff]  }
 0x3f8   : > { %1757 = vst [vmem:[%s3712_s30] sm:$0xff] %v1178_v4  ;;  %v1179_v7 = vmax.f32 %v1175_v5, 0.0 }
 0x3fa   : > { %v1180_v8 = vpack.c.bf16 %v1179_v7, %v1178_v4  ;;  %1758 = vst [vmem:[%s3712_s30 + $0x8] sm:$0xff] %v1179_v7  ;;  %s2959_s30 = scalar_lea.vmem %s3766_s23, 256 }
 0x3fb   : > { %p2960_p12 = scmp.ne.s32.totalorder %s3766_s23, %s2959_s30  ;;  %p2967_p7 = scmp.lt.s32.totalorder %s2965_s5, %s2959_s30 }
 0x3fc   : > { %2403 = vmatmul.mubr.bf16.vlgmr.msra.gmra.mrb[4].mxu1 %v1180_v8 }
 0x3fd   : > { %2442 = vmatprep.mubr.msk.bf16.mxu1 %vm3177_vm0, %v3176_v0  ;;  %2427 = vmatpush3.bf16.msra.mxu1 %v2681_v11  ;;  %p2961_p13 = pnand %p2960_p12, %p4069_p1  ;;  %p2968_p9 = por %p2967_p7, %p2966_p2 }
 0x3fe   : > { %2428 = vmatprep.subr.bf16.mxu1 %v3176_v0 }
 0x3ff   : > { %p2962_p0 = pneg %p2961_p13 }
 0x401   : > { %2429 = vmatpush3.bf16.msra.mxu1 %v2682_v12  ;;  %p2969_p10 = pnand %p2968_p9, %p2962_p0 }
 0x402   : > { %2430 = vmatprep.subr.bf16.mxu1 %v3176_v0 }
 0x405   : > { %2431 = vmatpush3.bf16.msra.mxu1 %v2683_v13 }
 0x406   : > { %2432 = vmatprep.subr.bf16.mxu1 %v3176_v0 }
 0x409   : > { %2433 = vmatpush3.bf16.msra.mxu1 %v2684_v14 }
 0x40a   : > { %2434 = vmatprep.subr.bf16.mxu1 %v3176_v0 }
 0x40d   : > { %2435 = vmatpush3.bf16.msra.mxu1 %v2685_v15 }
 0x40e   : > { %2436 = vmatprep.subr.bf16.mxu1 %v3176_v0 }
 0x411   : > { %2437 = vmatpush3.bf16.msra.mxu1 %v2686_v16 }
 0x412   : > { %2438 = vmatprep.subr.bf16.mxu1 %v3176_v0 }
 0x415   : > { %2439 = vmatpush3.bf16.msra.mxu1 %v2687_v25 }
 0x416   : > { %2440 = vmatprep.subr.bf16.mxu1 %v3176_v0 }
 0x419   : > { %2441 = vmatpush3.bf16.msra.mxu1 %v2688_v26 }
 0x41a   : > { %2466 = vmatprep.subr.bf16.mxu1 %v3176_v0 }
 0x4cf   : > { %v1286_v18 = vpop.f32.mrb[4].mxu1 }
 0x4d0   : > { %v1287_v19 = vadd.f32 %v2186_v17, %v1286_v18  ;;  %v2404_v20 = vpop.f32.mrb[5].mxu1 }
 0x4d1   : > { %v1289_v21 = vpop.f32.mrb[6].mxu1 }
 0x4d2   : > { %1759 = vst [vmem:[%s3730_s21] sm:$0xff] %v1287_v19  ;;  %v1290_v22 = vadd.f32 %v2186_v17, %v1289_v21  ;;  %v2405_v23 = vpop.f32.mrb[7].mxu1 }
 0x4d4   : > { %v1293_v24 = vpack.c.bf16 %v1290_v22, %v1287_v19  ;;  %1760 = vst [vmem:[%s3730_s21 + $0x8] sm:$0xff] %v1290_v22 }
 0x4d6   : > { %2423 = vmatmul.mubr.bf16.vlgmr.msra.gmra.mrb[8].mxu0 %v1293_v24 }
 0x4d7   : > { %2462 = vmatprep.mubr.msk.bf16.mxu0 %vm3177_vm0, %v3176_v0  ;;  %2447 = vmatpush3.bf16.msra.mxu0 %v2689_v27 }
 0x4d8   : > { %2448 = vmatprep.subr.bf16.mxu0 %v3176_v0 }
 0x4db   : > { %2449 = vmatpush3.bf16.msra.mxu0 %v2690_v28 }
 0x4dc   : > { %2450 = vmatprep.subr.bf16.mxu0 %v3176_v0 }
 0x4df   : > { %2451 = vmatpush3.bf16.msra.mxu0 %v2691_v29 }
 0x4e0   : > { %2452 = vmatprep.subr.bf16.mxu0 %v3176_v0 }
 0x4e3   : > { %2453 = vmatpush3.bf16.msra.mxu0 %v2692_v30 }
 0x4e4   : > { %2454 = vmatprep.subr.bf16.mxu0 %v3176_v0 }
 0x4e7   : > { %2455 = vmatpush3.bf16.msra.mxu0 %v2693_v31 }
 0x4e8   : > { %2456 = vmatprep.subr.bf16.mxu0 %v3176_v0 }
 0x4eb   : > { %2457 = vmatpush3.bf16.msra.mxu0 %v2694_v32 }
 0x4ec   : > { %2458 = vmatprep.subr.bf16.mxu0 %v3176_v0 }
 0x4ef   : > { %2459 = vmatpush3.bf16.msra.mxu0 %v2695_v43 }
 0x4f0   : > { %2460 = vmatprep.subr.bf16.mxu0 %v3176_v0 }
 0x4f3   : > { %2461 = vmatpush3.bf16.msra.mxu0 %v2696_v44 }
 0x5a9   : > { %v1399_v34 = vpop.f32.mrb[8].mxu0 }
 0x5aa   : > { %v1400_v35 = vadd.f32 %v2195_v33, %v1399_v34  ;;  %v2424_v36 = vpop.f32.mrb[9].mxu0 }
 0x5ab   : > { %v1402_v37 = vpop.f32.mrb[10].mxu0 }
 0x5ac   : > { %v1403_v38 = vadd.f32 %v2195_v33, %v1402_v37  ;;  %v2425_v39 = vpop.f32.mrb[11].mxu0  ;;  %v1406_v40 = vmax.f32 %v1400_v35, 0.0 }
 0x5ae   : > { %v1407_v41 = vmax.f32 %v1403_v38, 0.0 }
 0x5b0   : > { %v1408_v42 = vpack.c.bf16 %v1407_v41, %v1406_v40 }
 0x5b2   : > { %2443 = vmatmul.mubr.bf16.vlgmr.msra.gmra.mrb[8].mxu1 %v1408_v42 }
 0x5b3   : > { %2482 = vmatprep.mubr.msk.bf16.mxu1 %vm3177_vm0, %v3176_v0  ;;  %2467 = vmatpush3.bf16.msra.mxu1 %v2697_v45 }
 0x5b4   : > { %2468 = vmatprep.subr.bf16.mxu1 %v3176_v0 }
 0x5b7   : > { %2469 = vmatpush3.bf16.msra.mxu1 %v2698_v46 }
 0x5b8   : > { %2470 = vmatprep.subr.bf16.mxu1 %v3176_v0 }
 0x5bb   : > { %2471 = vmatpush3.bf16.msra.mxu1 %v2699_v47 }
 0x5bc   : > { %2472 = vmatprep.subr.bf16.mxu1 %v3176_v0 }
 0x5bf   : > { %2473 = vmatpush3.bf16.msra.mxu1 %v2700_v48 }
 0x5c0   : > { %2474 = vmatprep.subr.bf16.mxu1 %v3176_v0 }
 0x5c3   : > { %2475 = vmatpush3.bf16.msra.mxu1 %v2701_v49 }
 0x5c4   : > { %2476 = vmatprep.subr.bf16.mxu1 %v3176_v0 }
 0x5c7   : > { %2477 = vmatpush3.bf16.msra.mxu1 %v2702_v50 }
 0x5c8   : > { %2478 = vmatprep.subr.bf16.mxu1 %v3176_v0 }
 0x5cb   : > { %2479 = vmatpush3.bf16.msra.mxu1 %v2703_v61 }
 0x5cc   : > { %2480 = vmatprep.subr.bf16.mxu1 %v3176_v0 }
 0x5cf   : > { %2481 = vmatpush3.bf16.msra.mxu1 %v2704_v62 }
 0x685   : > { %v1514_v52 = vpop.f32.mrb[8].mxu1 }
 0x686   : > { %v1515_v53 = vadd.f32 %v2204_v51, %v1514_v52  ;;  %v2444_v54 = vpop.f32.mrb[9].mxu1 }
 0x687   : > { %v1517_v55 = vpop.f32.mrb[10].mxu1 }
 0x688   : > { %v1518_v56 = vadd.f32 %v2204_v51, %v1517_v55  ;;  %v2445_v57 = vpop.f32.mrb[11].mxu1  ;;  %v1521_v58 = vmax.f32 %v1515_v53, 0.0 }
 0x68a   : > { %v1522_v59 = vmax.f32 %v1518_v56, 0.0 }
 0x68c   : > { %v1523_v60 = vpack.c.bf16 %v1522_v59, %v1521_v58 }
 0x68e   : > { %2463 = vmatmul.mubr.bf16.vlgmr.msra.gmra.mrb[12].mxu0 %v1523_v60 }
 0x761   : > { %v1629_v1 = vpop.f32.mrb[12].mxu0 }
 0x762   : > { %v1630_v2 = vadd.f32 %v2213_v63, %v1629_v1  ;;  %v2464_v3 = vpop.f32.mrb[13].mxu0 }
 0x763   : > { %v1632_v4 = vpop.f32.mrb[14].mxu0 }
 0x764   : > { %v1633_v5 = vadd.f32 %v2213_v63, %v1632_v4  ;;  %v2465_v6 = vpop.f32.mrb[15].mxu0  ;;  %v1636_v7 = vmax.f32 %v1630_v2, 0.0 }
 0x766   : > { %v1637_v8 = vmax.f32 %v1633_v5, 0.0 }
 0x768   : > { %v1638_v0 = vpack.c.bf16 %v1637_v8, %v1636_v7 }
 0x76a   : > { %2483 = vmatmul.mubr.bf16.vlgmr.msra.gmra.mrb[12].mxu1 %v1638_v0 }
 0x76b   : > { %2972 = shalt.err (!%p2969_p10)
}
 0x76c   : > { %s2973_s1 = scalar_lea.hbm %s3781_s14, 256  ;;  %s2977_s7 = scalar_lea.hbm %s4068_s6, 768 }
 0x76d   : > { %p2974_p11 = scmp.ne.s32.totalorder %s3781_s14, %s2973_s1  ;;  %p2978_p6 = scmp.lt.u32.totalorder %s3781_s14, %s4068_s6 }
 0x76e   : > { %p2979_p5 = scmp.lt.u32.totalorder %s2977_s7, %s2973_s1  ;;  %p2981_p12 = scmp.lt.u32.totalorder %s2973_s1, %s3781_s14 }
 0x76f   : > { %p2975_p3 = pnand %p2974_p11, %p4069_p1 }
 0x770   : > { %p2980_p8 = por %p2979_p5, %p2978_p6 }
 0x771   : > { %p2976_p4 = pneg %p2975_p3 }
 0x772   : > { %p2982_p13 = por %p2981_p12, %p2980_p8 }
 0x774   : > { %p2983_p0 = pnand %p2982_p13, %p2976_p4 }
 0x776   : > { %2986 = shalt.err (!%p2983_p0)
}
 0x777   : > { %s3179_s5 = smov 128   ;;  %s3180_s0 = smov 8  }
 0x778   : > { %2521 = dma.vmem_to_hbm [thread:$0]  (%p4069_p1), %s3766_s23, 256, %s3781_s14, %s3785_s28, %s3179_s5, %s3179_s5, %s3180_s0  }
 0x779   : > { %s4070_s1 = sld [smem:[#allocation52_spill]]  ;;  %s4071_s7 = sand.u32 1, %s3316_s29  }
 0x77a   : > { %s3820_s8 = scalar_lea.sflag [#allocation22], %s4071_s7  ;;  %s2987_s6 = scalar_lea.vmem %s3770_s16, 256 }
 0x77b   : > { %p2988_p2 = scmp.ne.s32.totalorder %s3770_s16, %s2987_s6  ;;  %s3181_s13 = smov [#allocation21]  }
 0x77c   : > { %s2991_s15 = sshll.u32 %s3181_s13, 4  ;;  %s2992_s15 = int_to_ptr.vmem [resolvable:$false] %s2991_s15 }
 0x77d   : > { %p2989_p7 = pnand %p2988_p2, %p4069_p1  ;;  %s2993_s20 = scalar_lea.vmem %s2992_s15, 512 }
 0x77e   : > { %p2994_p10 = scmp.lt.s32.totalorder %s3770_s16, %s2992_s15  ;;  %p2995_p11 = scmp.lt.s32.totalorder %s2993_s20, %s2987_s6 }
 0x77f   : > { %s3816_s9 = scalar_lea.hbm %s4070_s1, %s3775_s19  ;;  %p2990_p9 = pneg %p2989_p7 }
 0x780   : > { %p2996_p3 = por %p2995_p11, %p2994_p10 }
 0x782   : > { %p2997_p4 = pnand %p2996_p3, %p2990_p9 }
 0x784   : > { %3000 = shalt.err (!%p2997_p4)
}
 0x785   : > { %s3001_s29 = scalar_lea.hbm %s3816_s9, 256  ;;  %s3005_s13 = scalar_lea.hbm %s4070_s1, 768 }
 0x786   : > { %p3002_p6 = scmp.ne.s32.totalorder %s3816_s9, %s3001_s29  ;;  %p3006_p12 = scmp.lt.u32.totalorder %s3816_s9, %s4070_s1 }
 0x787   : > { %p3007_p13 = scmp.lt.u32.totalorder %s3005_s13, %s3001_s29  ;;  %p3009_p2 = scmp.lt.u32.totalorder %s3001_s29, %s3816_s9 }
 0x788   : > { %p3003_p5 = pnand %p3002_p6, %p4069_p1 }
 0x789   : > { %p3008_p0 = por %p3007_p13, %p3006_p12 }
 0x78a   : > { %p3004_p8 = pneg %p3003_p5 }
 0x78b   : > { %p3010_p7 = por %p3009_p2, %p3008_p0 }
 0x78d   : > { %p3011_p9 = pnand %p3010_p7, %p3004_p8 }
 0x78f   : > { %3014 = shalt.err (!%p3011_p9)
}
 0x790   : > { %2523 = dma.vmem_to_hbm [thread:$0]  (%p4069_p1), %s3770_s16, 256, %s3816_s9, %s3820_s8, %s3179_s5, %s3179_s5, %s3180_s0  }
 0x791   : > { %s4072_s6 = sshll.u32 %s3730_s21, 4  ;;  %s4073_s7 = sld [smem:[#allocation51_spill]]  ;;  %s3849_s6 = int_to_ptr.vmem [resolvable:$true] %s4072_s6 }
 0x792   : > { %s4074_s13 = sld [smem:[#allocation53_spill]]  ;;  %s3015_s15 = scalar_lea.vmem %s3768_s18, 256 }
 0x793   : > { %p3016_p10 = scmp.ne.s32.totalorder %s3768_s18, %s3015_s15  ;;  %s3182_s1 = smov [#allocation20]  }
 0x794   : > { %s3019_s16 = sshll.u32 %s3182_s1, 4  ;;  %s3020_s16 = int_to_ptr.vmem [resolvable:$false] %s3019_s16 }
 0x795   : > { %p3017_p11 = pnand %p3016_p10, %p4069_p1  ;;  %s3021_s21 = scalar_lea.vmem %s3020_s16, 512 }
 0x796   : > { %p3022_p4 = scmp.lt.s32.totalorder %s3768_s18, %s3020_s16  ;;  %p3023_p6 = scmp.lt.s32.totalorder %s3021_s21, %s3015_s15 }
 0x797   : > { %s3855_s29 = scalar_lea.hbm %s4073_s7, %s3775_s19  ;;  %p3018_p3 = pneg %p3017_p11 }
 0x798   : > { %s3861_s11 = scalar_lea.hbm %s4074_s13, %s3775_s19  ;;  %p3024_p5 = por %p3023_p6, %p3022_p4 }
 0x79a   : > { %p3025_p8 = pnand %p3024_p5, %p3018_p3 }
 0x79c   : > { %3028 = shalt.err (!%p3025_p8)
}
 0x79d   : > { %s3029_s9 = scalar_lea.hbm %s3855_s29, 256  ;;  %s3033_s1 = scalar_lea.hbm %s4073_s7, 768 }
 0x79e   : > { %p3030_p12 = scmp.ne.s32.totalorder %s3855_s29, %s3029_s9  ;;  %p3034_p2 = scmp.lt.u32.totalorder %s3855_s29, %s4073_s7 }
 0x79f   : > { %p3035_p7 = scmp.lt.u32.totalorder %s3033_s1, %s3029_s9  ;;  %p3037_p10 = scmp.lt.u32.totalorder %s3029_s9, %s3855_s29 }
 0x7a0   : > { %p3031_p13 = pnand %p3030_p12, %p4069_p1 }
 0x7a1   : > { %p3036_p9 = por %p3035_p7, %p3034_p2 }
 0x7a2   : > { %p3032_p0 = pneg %p3031_p13 }
 0x7a3   : > { %p3038_p11 = por %p3037_p10, %p3036_p9 }
 0x7a5   : > { %p3039_p3 = pnand %p3038_p11, %p3032_p0 }
 0x7a7   : > { %3042 = shalt.err (!%p3039_p3)
}
 0x7a8   : > { %2522 = dma.vmem_to_hbm [thread:$0]  (%p4069_p1), %s3768_s18, 256, %s3855_s29, %s3785_s28, %s3179_s5, %s3179_s5, %s3180_s0  }
 0x7a9   : > { %s3043_s15 = scalar_lea.vmem %s3849_s6, 256  ;;  %s3183_s16 = smov [#allocation23]  }
 0x7aa   : > { %p3044_p4 = scmp.ne.s32.totalorder %s3849_s6, %s3043_s15  ;;  %s3047_s21 = sshll.u32 %s3183_s16, 4  ;;  %s3048_s21 = int_to_ptr.vmem [resolvable:$false] %s3047_s21 }
 0x7ab   : > { %s3049_s9 = scalar_lea.vmem %s3048_s21, 512  ;;  %p3050_p8 = scmp.lt.s32.totalorder %s3849_s6, %s3048_s21 }
 0x7ac   : > { %p3045_p6 = pnand %p3044_p4, %p4069_p1  ;;  %p3051_p12 = scmp.lt.s32.totalorder %s3049_s9, %s3043_s15 }
 0x7ae   : > { %p3046_p5 = pneg %p3045_p6  ;;  %p3052_p13 = por %p3051_p12, %p3050_p8 }
 0x7b0   : > { %p3053_p0 = pnand %p3052_p13, %p3046_p5 }
 0x7b2   : > { %3056 = shalt.err (!%p3053_p0)
}
 0x7b3   : > { %s3057_s18 = scalar_lea.hbm %s3861_s11, 256  ;;  %s3061_s20 = scalar_lea.hbm %s4074_s13, 768 }
 0x7b4   : > { %p3058_p2 = scmp.ne.s32.totalorder %s3861_s11, %s3057_s18  ;;  %p3062_p10 = scmp.lt.u32.totalorder %s3861_s11, %s4074_s13 }
 0x7b5   : > { %p3063_p11 = scmp.lt.u32.totalorder %s3061_s20, %s3057_s18  ;;  %p3065_p4 = scmp.lt.u32.totalorder %s3057_s18, %s3861_s11 }
 0x7b6   : > { %p3059_p7 = pnand %p3058_p2, %p4069_p1 }
 0x7b7   : > { %p3064_p3 = por %p3063_p11, %p3062_p10 }
 0x7b8   : > { %p3060_p9 = pneg %p3059_p7 }
 0x7b9   : > { %p3066_p6 = por %p3065_p4, %p3064_p3 }
 0x7bb   : > { %p3067_p5 = pnand %p3066_p6, %p3060_p9 }
 0x7bd   : > { %3070 = shalt.err (!%p3067_p5)
}
 0x7be   : > { %2524 = dma.vmem_to_hbm [thread:$0]  (%p4069_p1), %s3849_s6, 256, %s3861_s11, %s3820_s8, %s3179_s5, %s3179_s5, %s3180_s0  }
 0x7bf   : > { %s4075_s15 = sld [smem:[#allocation48_spill]]  ;;  %s797_s16 = scalar_lea.vmem [#allocation17], %s3614_s17 }
 0x7c0   : > { %s1795_s21 = sshll.u32 %s797_s16, 4  ;;  %s4076_s11 = sld [smem:[#allocation49_spill]]  ;;  %s3917_s21 = int_to_ptr.vmem [resolvable:$true] %s1795_s21 }
 0x7c1   : > { %s1762_s17 = scalar_lea.sflag [#allocation4], %s3611_s12  ;;  %s3071_s18 = scalar_lea.vmem %s3917_s21, 256 }
 0x7c2   : > { %p3072_p8 = scmp.ne.s32.totalorder %s3917_s21, %s3071_s18  ;;  %s3184_s28 = smov [#allocation17]  }
 0x7c3   : > { %s3075_s29 = sshll.u32 %s3184_s28, 4  ;;  %s3076_s29 = int_to_ptr.vmem [resolvable:$false] %s3075_s29 }
 0x7c4   : > { %p3073_p12 = pnand %p3072_p8, %p4069_p1  ;;  %s3077_s20 = scalar_lea.vmem %s3076_s29, 512 }
 0x7c5   : > { %v2222_v9 = vld [vmem:[%s4075_s15] ss:$0 sm:$0xff]  ;;  %p3078_p0 = scmp.lt.s32.totalorder %s3917_s21, %s3076_s29  ;;  %p3079_p2 = scmp.lt.s32.totalorder %s3077_s20, %s3071_s18 }
 0x7c6   : > { %s3923_s9 = scalar_lea.hbm %s4076_s11, %s3775_s19  ;;  %p3074_p13 = pneg %p3073_p12 }
 0x7c7   : > { %p3080_p7 = por %p3079_p2, %p3078_p0 }
 0x7c9   : > { %p3081_p9 = pnand %p3080_p7, %p3074_p13 }
 0x83d   : > { %v1744_v10 = vpop.f32.mrb[12].mxu1 }
 0x83e   : > { %v1745_v11 = vadd.f32 %v2222_v9, %v1744_v10  ;;  %v2484_v12 = vpop.f32.mrb[13].mxu1 }
 0x83f   : > { %v1747_v13 = vpop.f32.mrb[14].mxu1 }
 0x840   : > { %1751 = vst [vmem:[%s797_s16] sm:$0xff] %v1745_v11  ;;  %v1748_v14 = vadd.f32 %v2222_v9, %v1747_v13  ;;  %v2485_v15 = vpop.f32.mrb[15].mxu1 }
 0x842   : > { %1752 = vst [vmem:[%s797_s16 + $0x8] sm:$0xff] %v1748_v14 }
 0x843   : > { %3084 = shalt.err (!%p3081_p9)
}
 0x844   : > { %s3085_s19 = scalar_lea.hbm %s3923_s9, 256  ;;  %s3089_s23 = scalar_lea.hbm %s4076_s11, 768 }
 0x845   : > { %p3086_p10 = scmp.ne.s32.totalorder %s3923_s9, %s3085_s19  ;;  %p3090_p4 = scmp.lt.u32.totalorder %s3923_s9, %s4076_s11 }
 0x846   : > { %p3091_p6 = scmp.lt.u32.totalorder %s3089_s23, %s3085_s19  ;;  %p3093_p8 = scmp.lt.u32.totalorder %s3085_s19, %s3923_s9 }
 0x847   : > { %p3087_p11 = pnand %p3086_p10, %p4069_p1 }
 0x848   : > { %p3092_p5 = por %p3091_p6, %p3090_p4 }
 0x849   : > { %p3088_p3 = pneg %p3087_p11 }
 0x84a   : > { %p3094_p12 = por %p3093_p8, %p3092_p5 }
 0x84c   : > { %p3095_p13 = pnand %p3094_p12, %p3088_p3 }
 0x84e   : > { %3098 = shalt.err (!%p3095_p13)
}
 0x84f   : > { %2520 = dma.vmem_to_hbm [thread:$0]  (%p4069_p1), %s3917_s21, 256, %s3923_s9, %s1762_s17, %s3179_s5, %s3179_s5, %s3180_s0  }
 0x850 PF: > { %p2592_p0 = scmp.ge.s32.totalorder %s3161_s27, 2  ;;  %s1874_s16 = sand.u32 1, %s3149_s2  }
 0x851   : > { %p4077_p2 = scmp.ne.s32.totalorder %s4049_s22, 0  ;;  %s1875_s8 = scalar_lea.sflag [#allocation4], %s1874_s16 }
 0x853   : > { %p2560_p7 = pnand %p2592_p0, %p4077_p2 }
 0x855   : > { %3136 = dma.done.wait (!%p2560_p7), %s1875_s8, 256  }
 0x856   : > { %3138 = vsyncadd (!%p2560_p7), %s1875_s8, 4294967040  ;;  %s4078_s3 = sadd.s32 4294967294, %s3161_s27  }
 0x857   : > { %s1883_s6 = sand.u32 1, %s4078_s3  }
 0x858   : > { %s1884_s18 = scalar_lea.sflag [#allocation19], %s1883_s6 }
 0x859   : > { %3140 = dma.done.wait (!%p2560_p7), %s1884_s18, 512  }
 0x85a   : > { %3142 = vsyncadd (!%p2560_p7), %s1884_s18, 4294966784  ;;  %s1902_s12 = scalar_lea.sflag [#allocation22], %s1883_s6 }
 0x85b   : > { %3144 = dma.done.wait (!%p2560_p7), %s1902_s12, 512  }
 0x85c   : > { %3146 = vsyncadd (!%p2560_p7), %s1902_s12, 4294966784  ;;  %p45_p1 = scmp.ge.s32.totalorder %s3530_s4, 5   ;;  %s4079_s2 = smov %s3153_s25 }
 0x85d   : > { %s4080_s25 = smov %s3157_s26  ;;  %s4081_s26 = smov %s3541_s10 }
 0x85e   : > { %s4082_s27 = smov %s3530_s4  ;;  %47 = sbr.rel (!%p45_p1) target bundleno = 36 (0x24), region = 229 }
 0x865   :  { %1916 = vsyncpa [#allocation3], 1 }
 0x866   :  { %1918 = vsyncpa [#allocation3 + $0x1], 1 }
 0x867   :  { %1919 = vsyncpa [#allocation6], 1 }
 0x868   :  { %1920 = vsyncpa [#allocation9], 1 }
 0x869   :  { %1921 = vsyncpa [#allocation12], 1 }
 0x86a   :  { %1922 = vsyncpa [#allocation15], 1 }
 0x86b   :  { %1923 = vsyncpa [#allocation4], 1 }
 0x86c   :  { %1925 = vsyncpa [#allocation4 + $0x1], 1 }
 0x86d   :  { %1926 = vsyncpa [#allocation19], 1 }
 0x86e   :  { %1928 = vsyncpa [#allocation19 + $0x1], 1 }
 0x86f   :  { %1929 = vsyncpa [#allocation22], 1 }
 0x870   :  { %1931 = vsyncpa [#allocation22 + $0x1], 1 }

</bundles_post_ra>
